<compile_context>
chip_gen: v7x
topology: tpu7x:2x2x1
jax: 0.10.0
libtpu: 0.0.40
codegen_flags: <defaults>
</compile_context>

<pallas_src>
import functools
import math

import jax
import jax.numpy as jnp
from jax.experimental import pallas as pl
from jax.experimental.pallas import tpu as pltpu


# ----------------------------------------------------------------------------
# Fused Pallas GEMM kernels: O = [relu](A) @ B (+ R), bf16 MXU, f32 accumulate.
# ----------------------------------------------------------------------------
_LANE = 128


def _vmem_capacity_bytes():
    """Best-effort physical-VMEM query; conservative default on failure."""
    try:
        info = pltpu.get_tpu_info()
        for attr in ("vmem_capacity_bytes", "vmem_size_bytes", "vmem_bytes"):
            v = getattr(info, attr, None)
            if isinstance(v, int) and v > 0:
                return v
    except Exception:
        pass
    return 64 * 1024 * 1024  # assume v7x-like per-core VMEM when unknown


@functools.lru_cache(maxsize=None)
def _budgets():
    vmem = _vmem_capacity_bytes()
    if vmem >= 96 * 1024 * 1024:
        # v5e / v6e: 128 MiB physical VMEM -> keep B resident much longer,
        # raise the scoped-VMEM limit so XLA does not reject the tile set.
        return dict(vmem_limit=96 * 1024 * 1024, max_resident_k=4096, tk=1024)
    # v7x: 64 MiB per TensorCore -> cap the scoped limit and resident K.
    return dict(vmem_limit=44 * 1024 * 1024, max_resident_k=2048, tk=512)


def _round_up(x, m):
    return ((x + m - 1) // m) * m


def _choose_tm(M):
    """Pick an M tile. Prefer large tiles, but keep nm >= 2 when possible so the
    'parallel' M axis spreads over both TensorCores on v7x."""
    for t in (512, 256, 128, 64, 32, 16, 8):
        if M % t == 0 and M // t >= 2:
            return t, M
    for t in (512, 256, 128, 64, 32, 16, 8):
        if M % t == 0:
            return t, M
    # Fallback: pad rows with zeros up to a multiple of 256 (sliced off after).
    Mp = _round_up(M, 256)
    if Mp // 256 >= 2:
        return 256, Mp
    return 128, Mp


def _gemm_kernel_resident(*refs, relu_a: bool, has_res: bool):
    """nk == 1 path: full-K resident B, no scratch accumulator."""
    if has_res:
        a_ref, b_ref, r_ref, o_ref = refs
    else:
        a_ref, b_ref, o_ref = refs
        r_ref = None
    a = a_ref[...]
    if relu_a:
        a = jnp.maximum(a, 0)
    out = jnp.dot(a, b_ref[...], preferred_element_type=jnp.float32)
    if has_res:
        out = out + r_ref[...].astype(jnp.float32)
    o_ref[...] = out.astype(o_ref.dtype)


def _gemm_kernel_ktiled(*refs, relu_a: bool, has_res: bool):
    """K-tiled path: f32 VMEM accumulator with pl.when init/finalize."""
    if has_res:
        a_ref, b_ref, r_ref, o_ref, acc_ref = refs
    else:
        a_ref, b_ref, o_ref, acc_ref = refs
        r_ref = None
    k = pl.program_id(1)

    @pl.when(k == 0)
    def _():
        acc_ref[...] = jnp.zeros_like(acc_ref)

    a = a_ref[...]
    if relu_a:
        a = jnp.maximum(a, 0)
    acc_ref[...] += jnp.dot(a, b_ref[...], preferred_element_type=jnp.float32)

    @pl.when(k == pl.num_programs(1) - 1)
    def _():
        out = acc_ref[...]
        if has_res:
            out = out + r_ref[...].astype(jnp.float32)
        o_ref[...] = out.astype(o_ref.dtype)


def pallas_gemm(a, b, residual=None, *, relu_a=False, out_dtype=jnp.bfloat16):
    """a: (M, K), b: (K, N) -> (M, N) on the MXU.

    Optionally applies ReLU to A inside the kernel and adds `residual` (M, N)
    in the epilogue. Operands stream as bf16; accumulation is f32; output dtype
    is `out_dtype` (bf16 for internal activations, f32 for the final conv).
    """
    M, K = a.shape
    K2, N = b.shape
    assert K == K2
    has_res = residual is not None
    budget = _budgets()

    # bf16 MXU operands / residual stream (no-op if already bf16).
    a = a.astype(jnp.bfloat16)
    b = b.astype(jnp.bfloat16)
    if has_res:
        residual = residual.astype(jnp.bfloat16)

    # Lane-dense output: pad Cout to a multiple of 128 with zero columns (exact).
    Np = _round_up(N, _LANE)
    if Np != N:
        b = jnp.pad(b, ((0, 0), (0, Np - N)))
        if has_res:
            residual = jnp.pad(residual, ((0, 0), (0, Np - N)))

    # K handling: resident B when it fits; otherwise K-tile with an accumulator.
    # Always pad K to a multiple of 128 (zero cols of A x zero rows of B: exact)
    # so A loads and the MXU feed are unmasked.
    if K <= budget["max_resident_k"]:
        tk = Kp = _round_up(K, _LANE)
    else:
        tk = budget["tk"]
        Kp = _round_up(K, tk)
    if Kp != K:
        a = jnp.pad(a, ((0, 0), (0, Kp - K)))
        b = jnp.pad(b, ((0, Kp - K), (0, 0)))

    # M tiling (prefer big tiles; keep >= 2 tiles for dual-TC v7x).
    tm, Mp = _choose_tm(M)
    if Mp != M:
        a = jnp.pad(a, ((0, Mp - M), (0, 0)))
        if has_res:
            residual = jnp.pad(residual, ((0, Mp - M), (0, 0)))
    nm, nk = Mp // tm, Kp // tk

    if nk == 1:
        # Common path: no scratch accumulator, direct store.
        in_specs = [
            pl.BlockSpec((tm, Kp), lambda i: (i, 0)),   # A tile
            pl.BlockSpec((Kp, Np), lambda i: (0, 0)),   # resident B
        ]
        operands = [a, b]
        if has_res:
            in_specs.append(pl.BlockSpec((tm, Np), lambda i: (i, 0)))
            operands.append(residual)
        out = pl.pallas_call(
            functools.partial(_gemm_kernel_resident, relu_a=relu_a,
                              has_res=has_res),
            out_shape=jax.ShapeDtypeStruct((Mp, Np), out_dtype),
            grid=(nm,),
            in_specs=in_specs,
            out_specs=pl.BlockSpec((tm, Np), lambda i: (i, 0)),
            compiler_params=pltpu.CompilerParams(
                dimension_semantics=("parallel",),
                vmem_limit_bytes=budget["vmem_limit"]),
        )(*operands)
    else:
        # TODO(synk): consider pipeline_mode=pl.Buffered(3) on A/B streams here
        # (v6e) once verified against the installed Pallas version.
        in_specs = [
            pl.BlockSpec((tm, tk), lambda i, k: (i, k)),   # A tile
            pl.BlockSpec((tk, Np), lambda i, k: (k, 0)),   # B tile
        ]
        operands = [a, b]
        if has_res:
            in_specs.append(pl.BlockSpec((tm, Np), lambda i, k: (i, 0)))
            operands.append(residual)
        out = pl.pallas_call(
            functools.partial(_gemm_kernel_ktiled, relu_a=relu_a,
                              has_res=has_res),
            out_shape=jax.ShapeDtypeStruct((Mp, Np), out_dtype),
            grid=(nm, nk),
            in_specs=in_specs,
            out_specs=pl.BlockSpec((tm, Np), lambda i, k: (i, 0)),
            scratch_shapes=[pltpu.VMEM((tm, Np), jnp.float32)],
            compiler_params=pltpu.CompilerParams(
                dimension_semantics=("parallel", "arbitrary"),
                vmem_limit_bytes=budget["vmem_limit"]),
        )(*operands)
    return out[:M, :N]


# ----------------------------------------------------------------------------
# Conv layers built on the Pallas GEMM (im2col / BN-fold glue in jitted JAX).
# ----------------------------------------------------------------------------
# TODO(synk): the 9-tap im2col gather stays in jitted XLA glue (one bf16 fusion);
# moving it fully in-kernel needs in-kernel 4D->2D reshapes of sub-128 lane
# tiles, which is left out to keep Mosaic lowering robust at these shapes.
def conv3x3(x, w, *, stride=1, relu_in=False, inv_scale=None, residual=None,
            out_dtype=jnp.bfloat16):
    """x: (N,H,W,Cin) NHWC.  w: (Cout,Cin,3,3) PyTorch layout.  padding=1."""
    n, h, wd, cin = x.shape
    cout = w.shape[0]
    if inv_scale is not None:
        w = w * inv_scale[None, :, None, None]        # fold BN 1/std (f32)
    xp = jnp.pad(x, ((0, 0), (1, 1), (1, 1), (0, 0)))
    ho = (h + 2 - 3) // stride + 1
    wo = (wd + 2 - 3) // stride + 1
    cols = []
    for dy in range(3):
        for dx in range(3):
            sl = xp[:, dy::stride, dx::stride, :][:, :ho, :wo, :]
            cols.append(sl.astype(jnp.bfloat16))      # im2col materialized bf16
    patches = jnp.concatenate(cols, axis=-1)          # (N,Ho,Wo,9*Cin)
    a = patches.reshape(n * ho * wo, 9 * cin)
    wm = jnp.transpose(w, (2, 3, 1, 0)).reshape(9 * cin, cout)
    r = residual.reshape(n * ho * wo, cout) if residual is not None else None
    out = pallas_gemm(a, wm, residual=r, relu_a=relu_in, out_dtype=out_dtype)
    return out.reshape(n, ho, wo, cout)


def conv1x1(x, w, *, relu_in=False, inv_scale=None, out_dtype=jnp.float32):
    """x: (N,H,W,Cin).  w: (Cout,Cin,1,1)."""
    n, h, wd, cin = x.shape
    cout = w.shape[0]
    if inv_scale is not None:
        w = w * inv_scale[None, :, None, None]
    a = x.reshape(n * h * wd, cin)
    wm = jnp.transpose(w[:, :, 0, 0], (1, 0))
    out = pallas_gemm(a, wm, relu_a=relu_in, out_dtype=out_dtype)
    return out.reshape(n, h, wd, cout)


# ----------------------------------------------------------------------------
# Cheap glue ops (BN statistics, pooling) — fused by XLA under jit.
# ----------------------------------------------------------------------------
def bn_stats(x, eps=1e-5):
    """Training-mode BN (affine=False): returns (x - mean [f32], 1/sqrt(var+eps)).

    Statistics are computed in f32 regardless of the (bf16) activation dtype.
    """
    xf = x.astype(jnp.float32)
    mean = jnp.mean(xf, axis=(0, 1, 2), keepdims=True)
    var = jnp.mean(jnp.square(xf - mean), axis=(0, 1, 2), keepdims=True)
    inv = jax.lax.rsqrt(var + eps)
    return xf - mean, inv.reshape(-1)


def batchnorm(x, eps=1e-5):
    """Full BN apply (used for bn_last, whose affine is identity at init)."""
    xc, inv = bn_stats(x, eps)
    return xc * inv[None, None, None, :]


def avg_pool_3x3_s2(x):
    """F.avg_pool2d(kernel=3, padding=1, stride=2), count_include_pad=True."""
    s = jax.lax.reduce_window(
        x.astype(jnp.float32), 0.0, jax.lax.add,
        window_dimensions=(1, 3, 3, 1), window_strides=(1, 2, 2, 1),
        padding=[(0, 0), (1, 1), (1, 1), (0, 0)])
    return s / 9.0


# ----------------------------------------------------------------------------
# Residual blocks and full network.
# ----------------------------------------------------------------------------
def block(x, w0, w1):
    xc, inv0 = bn_stats(x)
    h = conv3x3(xc, w0, stride=1, relu_in=True, inv_scale=inv0)
    hc, inv1 = bn_stats(h)
    return conv3x3(hc, w1, stride=1, relu_in=True, inv_scale=inv1, residual=x)


def downsample_block(x, w0, w1):
    xc, inv0 = bn_stats(x)
    h = conv3x3(xc, w0, stride=2, relu_in=True, inv_scale=inv0)
    hc, inv1 = bn_stats(h)
    x_d = avg_pool_3x3_s2(x)
    x_d = jnp.concatenate([x_d, jnp.zeros_like(x_d)], axis=-1)
    return conv3x3(hc, w1, stride=1, relu_in=True, inv_scale=inv1, residual=x_d)


def wrn_mcdonnell_forward(x_nchw, params):
    x = jnp.transpose(x_nchw, (0, 2, 3, 1)).astype(jnp.float32)   # NCHW -> NHWC
    # conv0 special case: pad Cin 3 -> 8 (zero channels / zero weights; exact)
    x = jnp.pad(x, ((0, 0), (0, 0), (0, 0), (0, 5)))
    w0 = jnp.pad(params["conv0"], ((0, 0), (0, 5), (0, 0), (0, 0)))
    h = conv3x3(x, w0, stride=1, relu_in=False)

    for wa, wb in params["group0"]:
        h = block(h, wa, wb)
    for j, (wa, wb) in enumerate(params["group1"]):
        h = downsample_block(h, wa, wb) if j == 0 else block(h, wa, wb)
    for j, (wa, wb) in enumerate(params["group2"]):
        h = downsample_block(h, wa, wb) if j == 0 else block(h, wa, wb)

    hc, inv = bn_stats(h)                                   # self.bn (affine=False)
    h = conv1x1(hc, params["conv_last"], relu_in=True, inv_scale=inv,
                out_dtype=jnp.float32)                      # last conv stays f32
    h = batchnorm(h)                                        # bn_last (w=1, b=0 at init)
    return jnp.mean(h, axis=(1, 2))                         # global avg pool -> (N, C)


# ----------------------------------------------------------------------------
# Deterministic parameter init (kaiming_normal_, mode='fan_out', relu).
# ----------------------------------------------------------------------------
def init_weight(key, cout, cin, kh, kw):
    std = math.sqrt(2.0 / (cout * kh * kw))
    return jax.random.normal(key, (cout, cin, kh, kw), jnp.float32) * std


def make_params(key, depth, width, num_classes):
    widths = [int(v * width) for v in (16, 32, 64)]
    n = (depth - 2) // 6
    keys = iter(jax.random.split(key, 2 + 6 * n + 10))
    params = {"conv0": init_weight(next(keys), widths[0], 3, 3, 3)}

    def make_group(w, n_blocks, downsample):
        blocks = []
        for j in range(n_blocks):
            if downsample and j == 0:
                wa = init_weight(next(keys), w, w // 2, 3, 3)
            else:
                wa = init_weight(next(keys), w, w, 3, 3)
            wb = init_weight(next(keys), w, w, 3, 3)
            blocks.append((wa, wb))
        return blocks

    params["group0"] = make_group(widths[0], n, downsample=False)
    params["group1"] = make_group(widths[1], n, downsample=True)
    params["group2"] = make_group(widths[2], n, downsample=True)
    params["conv_last"] = init_weight(next(keys), num_classes, widths[2], 1, 1)
    return params


if __name__ == "__main__":
    key = jax.random.PRNGKey(0)
    k_params, k_x = jax.random.split(key)

    depth, width, num_classes = 10, 1, 10          # n = 1 block per group
    params = make_params(k_params, depth, width, num_classes)

    x = jax.random.normal(k_x, (2, 3, 16, 16), jnp.float32)   # NCHW like PyTorch

    forward = jax.jit(wrn_mcdonnell_forward)       # fuse all inter-kernel glue
    out = forward(x, params)
    out = jax.block_until_ready(out)
    assert out.shape == (2, num_classes)
    assert bool(jnp.all(jnp.isfinite(out)))
    print("KERNEL_OK")
</pallas_src>

<mosaic_0001>
module attributes {stable_mosaic.version = 11 : i64} {
  func.func @_gemm_kernel_resident(%arg0: i32, %arg1: memref<256x128xbf16, #tpu.memory_space<vmem>>, %arg2: memref<128x128xbf16, #tpu.memory_space<vmem>>, %arg3: memref<256x128xbf16, #tpu.memory_space<vmem>>) attributes {dimension_semantics = [#tpu.dimension_semantics<parallel>], iteration_bounds = array<i64: 2>, scalar_prefetch = 0 : i64, scratch_operands = 0 : i64, tpu.core_type = #tpu.core_type<tc>, window_params = [{transform_indices = @transform_0, window_bounds = array<i64: 256, 128>}, {pipeline_mode = #tpu.pipeline_mode<synchronous>, transform_indices = @transform_1, window_bounds = array<i64: 128, 128>}, {transform_indices = @transform_2, window_bounds = array<i64: 256, 128>}]} {
    %c0 = arith.constant 0 : index
    %c0_0 = arith.constant 0 : index
    %0 = vector.load %arg1[%c0, %c0_0] : memref<256x128xbf16, #tpu.memory_space<vmem>>, vector<256x128xbf16>
    %c0_1 = arith.constant 0 : index
    %c0_2 = arith.constant 0 : index
    %1 = vector.load %arg2[%c0_1, %c0_2] : memref<128x128xbf16, #tpu.memory_space<vmem>>, vector<128x128xbf16>
    %cst = arith.constant dense<0.000000e+00> : vector<256x128xf32>
    %2 = tpu.matmul %0, %1, %cst {dimension_numbers = #tpu.dot_dimension_numbers<[1], [0], [0], [1], [0, 0, 1, 1], [], []>} : vector<256x128xbf16>, vector<128x128xbf16>, vector<256x128xf32> -> vector<256x128xf32>
    %3 = arith.truncf %2 : vector<256x128xf32> to vector<256x128xbf16>
    %c0_3 = arith.constant 0 : index
    %c0_4 = arith.constant 0 : index
    %4 = vector.load %arg3[%c0_3, %c0_4] : memref<256x128xbf16, #tpu.memory_space<vmem>>, vector<256x128xbf16>
    tpu.vector_store %arg3[%c0_3, %c0_4], %3 {strides = array<i32>} : memref<256x128xbf16, #tpu.memory_space<vmem>>, vector<256x128xbf16>,
    return
  }
  func.func @transform_0(%arg0: i32) -> (i32, i32) {
    %c0_i32 = arith.constant 0 : i32
    %c0_i32_0 = arith.constant 0 : i32
    return %arg0, %c0_i32 : i32, i32
  }
  func.func @transform_1(%arg0: i32) -> (i32, i32) {
    %c0_i32 = arith.constant 0 : i32
    %c0_i32_0 = arith.constant 0 : i32
    %c0_i32_1 = arith.constant 0 : i32
    return %c0_i32, %c0_i32_0 : i32, i32
  }
  func.func @transform_2(%arg0: i32) -> (i32, i32) {
    %c0_i32 = arith.constant 0 : i32
    %c0_i32_0 = arith.constant 0 : i32
    return %arg0, %c0_i32 : i32, i32
  }
}

module attributes {stable_mosaic.version = 11 : i64} {
  func.func @_gemm_kernel_resident(%arg0: i32, %arg1: memref<256x256xbf16, #tpu.memory_space<vmem>>, %arg2: memref<256x128xbf16, #tpu.memory_space<vmem>>, %arg3: memref<256x128xbf16, #tpu.memory_space<vmem>>) attributes {dimension_semantics = [#tpu.dimension_semantics<parallel>], iteration_bounds = array<i64: 2>, scalar_prefetch = 0 : i64, scratch_operands = 0 : i64, tpu.core_type = #tpu.core_type<tc>, window_params = [{transform_indices = @transform_0, window_bounds = array<i64: 256, 256>}, {pipeline_mode = #tpu.pipeline_mode<synchronous>, transform_indices = @transform_1, window_bounds = array<i64: 256, 128>}, {transform_indices = @transform_2, window_bounds = array<i64: 256, 128>}]} {
    %c0 = arith.constant 0 : index
    %c0_0 = arith.constant 0 : index
    %0 = vector.load %arg1[%c0, %c0_0] : memref<256x256xbf16, #tpu.memory_space<vmem>>, vector<256x256xbf16>
    %cst = arith.constant 0.000000e+00 : bf16
    %1 = vector.broadcast %cst : bf16 to vector<256x256xbf16>
    %2 = arith.maximumf %0, %1 : vector<256x256xbf16>
    %c0_1 = arith.constant 0 : index
    %c0_2 = arith.constant 0 : index
    %3 = vector.load %arg2[%c0_1, %c0_2] : memref<256x128xbf16, #tpu.memory_space<vmem>>, vector<256x128xbf16>
    %cst_3 = arith.constant dense<0.000000e+00> : vector<256x128xf32>
    %4 = tpu.matmul %2, %3, %cst_3 {dimension_numbers = #tpu.dot_dimension_numbers<[1], [0], [0], [1], [0, 0, 1, 1], [], []>} : vector<256x256xbf16>, vector<256x128xbf16>, vector<256x128xf32> -> vector<256x128xf32>
    %5 = arith.truncf %4 : vector<256x128xf32> to vector<256x128xbf16>
    %c0_4 = arith.constant 0 : index
    %c0_5 = arith.constant 0 : index
    %6 = vector.load %arg3[%c0_4, %c0_5] : memref<256x128xbf16, #tpu.memory_space<vmem>>, vector<256x128xbf16>
    tpu.vector_store %arg3[%c0_4, %c0_5], %5 {strides = array<i32>} : memref<256x128xbf16, #tpu.memory_space<vmem>>, vector<256x128xbf16>,
    return
  }
  func.func @transform_0(%arg0: i32) -> (i32, i32) {
    %c0_i32 = arith.constant 0 : i32
    %c0_i32_0 = arith.constant 0 : i32
    return %arg0, %c0_i32 : i32, i32
  }
  func.func @transform_1(%arg0: i32) -> (i32, i32) {
    %c0_i32 = arith.constant 0 : i32
    %c0_i32_0 = arith.constant 0 : i32
    %c0_i32_1 = arith.constant 0 : i32
    return %c0_i32, %c0_i32_0 : i32, i32
  }
  func.func @transform_2(%arg0: i32) -> (i32, i32) {
    %c0_i32 = arith.constant 0 : i32
    %c0_i32_0 = arith.constant 0 : i32
    return %arg0, %c0_i32 : i32, i32
  }
}

module attributes {stable_mosaic.version = 11 : i64} {
  func.func @_gemm_kernel_resident(%arg0: i32, %arg1: memref<256x256xbf16, #tpu.memory_space<vmem>>, %arg2: memref<256x128xbf16, #tpu.memory_space<vmem>>, %arg3: memref<256x128xbf16, #tpu.memory_space<vmem>>, %arg4: memref<256x128xbf16, #tpu.memory_space<vmem>>) attributes {dimension_semantics = [#tpu.dimension_semantics<parallel>], iteration_bounds = array<i64: 2>, scalar_prefetch = 0 : i64, scratch_operands = 0 : i64, tpu.core_type = #tpu.core_type<tc>, window_params = [{transform_indices = @transform_0, window_bounds = array<i64: 256, 256>}, {pipeline_mode = #tpu.pipeline_mode<synchronous>, transform_indices = @transform_1, window_bounds = array<i64: 256, 128>}, {transform_indices = @transform_2, window_bounds = array<i64: 256, 128>}, {transform_indices = @transform_3, window_bounds = array<i64: 256, 128>}]} {
    %c0 = arith.constant 0 : index
    %c0_0 = arith.constant 0 : index
    %0 = vector.load %arg1[%c0, %c0_0] : memref<256x256xbf16, #tpu.memory_space<vmem>>, vector<256x256xbf16>
    %cst = arith.constant 0.000000e+00 : bf16
    %1 = vector.broadcast %cst : bf16 to vector<256x256xbf16>
    %2 = arith.maximumf %0, %1 : vector<256x256xbf16>
    %c0_1 = arith.constant 0 : index
    %c0_2 = arith.constant 0 : index
    %3 = vector.load %arg2[%c0_1, %c0_2] : memref<256x128xbf16, #tpu.memory_space<vmem>>, vector<256x128xbf16>
    %cst_3 = arith.constant dense<0.000000e+00> : vector<256x128xf32>
    %4 = tpu.matmul %2, %3, %cst_3 {dimension_numbers = #tpu.dot_dimension_numbers<[1], [0], [0], [1], [0, 0, 1, 1], [], []>} : vector<256x256xbf16>, vector<256x128xbf16>, vector<256x128xf32> -> vector<256x128xf32>
    %c0_4 = arith.constant 0 : index
    %c0_5 = arith.constant 0 : index
    %5 = vector.load %arg3[%c0_4, %c0_5] : memref<256x128xbf16, #tpu.memory_space<vmem>>, vector<256x128xbf16>
    %6 = arith.extf %5 : vector<256x128xbf16> to vector<256x128xf32>
    %7 = arith.addf %4, %6 : vector<256x128xf32>
    %8 = arith.truncf %7 : vector<256x128xf32> to vector<256x128xbf16>
    %c0_6 = arith.constant 0 : index
    %c0_7 = arith.constant 0 : index
    %9 = vector.load %arg4[%c0_6, %c0_7] : memref<256x128xbf16, #tpu.memory_space<vmem>>, vector<256x128xbf16>
    tpu.vector_store %arg4[%c0_6, %c0_7], %8 {strides = array<i32>} : memref<256x128xbf16, #tpu.memory_space<vmem>>, vector<256x128xbf16>,
    return
  }
  func.func @transform_0(%arg0: i32) -> (i32, i32) {
    %c0_i32 = arith.constant 0 : i32
    %c0_i32_0 = arith.constant 0 : i32
    return %arg0, %c0_i32 : i32, i32
  }
  func.func @transform_1(%arg0: i32) -> (i32, i32) {
    %c0_i32 = arith.constant 0 : i32
    %c0_i32_0 = arith.constant 0 : i32
    %c0_i32_1 = arith.constant 0 : i32
    return %c0_i32, %c0_i32_0 : i32, i32
  }
  func.func @transform_2(%arg0: i32) -> (i32, i32) {
    %c0_i32 = arith.constant 0 : i32
    %c0_i32_0 = arith.constant 0 : i32
    return %arg0, %c0_i32 : i32, i32
  }
  func.func @transform_3(%arg0: i32) -> (i32, i32) {
    %c0_i32 = arith.constant 0 : i32
    %c0_i32_0 = arith.constant 0 : i32
    return %arg0, %c0_i32 : i32, i32
  }
}

module attributes {stable_mosaic.version = 11 : i64} {
  func.func @_gemm_kernel_resident(%arg0: i32, %arg1: memref<64x256xbf16, #tpu.memory_space<vmem>>, %arg2: memref<256x128xbf16, #tpu.memory_space<vmem>>, %arg3: memref<64x128xbf16, #tpu.memory_space<vmem>>) attributes {dimension_semantics = [#tpu.dimension_semantics<parallel>], iteration_bounds = array<i64: 2>, scalar_prefetch = 0 : i64, scratch_operands = 0 : i64, tpu.core_type = #tpu.core_type<tc>, window_params = [{transform_indices = @transform_0, window_bounds = array<i64: 64, 256>}, {pipeline_mode = #tpu.pipeline_mode<synchronous>, transform_indices = @transform_1, window_bounds = array<i64: 256, 128>}, {transform_indices = @transform_2, window_bounds = array<i64: 64, 128>}]} {
    %c0 = arith.constant 0 : index
    %c0_0 = arith.constant 0 : index
    %0 = vector.load %arg1[%c0, %c0_0] : memref<64x256xbf16, #tpu.memory_space<vmem>>, vector<64x256xbf16>
    %cst = arith.constant 0.000000e+00 : bf16
    %1 = vector.broadcast %cst : bf16 to vector<64x256xbf16>
    %2 = arith.maximumf %0, %1 : vector<64x256xbf16>
    %c0_1 = arith.constant 0 : index
    %c0_2 = arith.constant 0 : index
    %3 = vector.load %arg2[%c0_1, %c0_2] : memref<256x128xbf16, #tpu.memory_space<vmem>>, vector<256x128xbf16>
    %cst_3 = arith.constant dense<0.000000e+00> : vector<64x128xf32>
    %4 = tpu.matmul %2, %3, %cst_3 {dimension_numbers = #tpu.dot_dimension_numbers<[1], [0], [0], [1], [0, 0, 1, 1], [], []>} : vector<64x256xbf16>, vector<256x128xbf16>, vector<64x128xf32> -> vector<64x128xf32>
    %5 = arith.truncf %4 : vector<64x128xf32> to vector<64x128xbf16>
    %c0_4 = arith.constant 0 : index
    %c0_5 = arith.constant 0 : index
    %6 = vector.load %arg3[%c0_4, %c0_5] : memref<64x128xbf16, #tpu.memory_space<vmem>>, vector<64x128xbf16>
    tpu.vector_store %arg3[%c0_4, %c0_5], %5 {strides = array<i32>} : memref<64x128xbf16, #tpu.memory_space<vmem>>, vector<64x128xbf16>,
    return
  }
  func.func @transform_0(%arg0: i32) -> (i32, i32) {
    %c0_i32 = arith.constant 0 : i32
    %c0_i32_0 = arith.constant 0 : i32
    return %arg0, %c0_i32 : i32, i32
  }
  func.func @transform_1(%arg0: i32) -> (i32, i32) {
    %c0_i32 = arith.constant 0 : i32
    %c0_i32_0 = arith.constant 0 : i32
    %c0_i32_1 = arith.constant 0 : i32
    return %c0_i32, %c0_i32_0 : i32, i32
  }
  func.func @transform_2(%arg0: i32) -> (i32, i32) {
    %c0_i32 = arith.constant 0 : i32
    %c0_i32_0 = arith.constant 0 : i32
    return %arg0, %c0_i32 : i32, i32
  }
}

module attributes {stable_mosaic.version = 11 : i64} {
  func.func @_gemm_kernel_resident(%arg0: i32, %arg1: memref<64x384xbf16, #tpu.memory_space<vmem>>, %arg2: memref<384x128xbf16, #tpu.memory_space<vmem>>, %arg3: memref<64x128xbf16, #tpu.memory_space<vmem>>, %arg4: memref<64x128xbf16, #tpu.memory_space<vmem>>) attributes {dimension_semantics = [#tpu.dimension_semantics<parallel>], iteration_bounds = array<i64: 2>, scalar_prefetch = 0 : i64, scratch_operands = 0 : i64, tpu.core_type = #tpu.core_type<tc>, window_params = [{transform_indices = @transform_0, window_bounds = array<i64: 64, 384>}, {pipeline_mode = #tpu.pipeline_mode<synchronous>, transform_indices = @transform_1, window_bounds = array<i64: 384, 128>}, {transform_indices = @transform_2, window_bounds = array<i64: 64, 128>}, {transform_indices = @transform_3, window_bounds = array<i64: 64, 128>}]} {
    %c0 = arith.constant 0 : index
    %c0_0 = arith.constant 0 : index
    %0 = vector.load %arg1[%c0, %c0_0] : memref<64x384xbf16, #tpu.memory_space<vmem>>, vector<64x384xbf16>
    %cst = arith.constant 0.000000e+00 : bf16
    %1 = vector.broadcast %cst : bf16 to vector<64x384xbf16>
    %2 = arith.maximumf %0, %1 : vector<64x384xbf16>
    %c0_1 = arith.constant 0 : index
    %c0_2 = arith.constant 0 : index
    %3 = vector.load %arg2[%c0_1, %c0_2] : memref<384x128xbf16, #tpu.memory_space<vmem>>, vector<384x128xbf16>
    %cst_3 = arith.constant dense<0.000000e+00> : vector<64x128xf32>
    %4 = tpu.matmul %2, %3, %cst_3 {dimension_numbers = #tpu.dot_dimension_numbers<[1], [0], [0], [1], [0, 0, 1, 1], [], []>} : vector<64x384xbf16>, vector<384x128xbf16>, vector<64x128xf32> -> vector<64x128xf32>
    %c0_4 = arith.constant 0 : index
    %c0_5 = arith.constant 0 : index
    %5 = vector.load %arg3[%c0_4, %c0_5] : memref<64x128xbf16, #tpu.memory_space<vmem>>, vector<64x128xbf16>
    %6 = arith.extf %5 : vector<64x128xbf16> to vector<64x128xf32>
    %7 = arith.addf %4, %6 : vector<64x128xf32>
    %8 = arith.truncf %7 : vector<64x128xf32> to vector<64x128xbf16>
    %c0_6 = arith.constant 0 : index
    %c0_7 = arith.constant 0 : index
    %9 = vector.load %arg4[%c0_6, %c0_7] : memref<64x128xbf16, #tpu.memory_space<vmem>>, vector<64x128xbf16>
    tpu.vector_store %arg4[%c0_6, %c0_7], %8 {strides = array<i32>} : memref<64x128xbf16, #tpu.memory_space<vmem>>, vector<64x128xbf16>,
    return
  }
  func.func @transform_0(%arg0: i32) -> (i32, i32) {
    %c0_i32 = arith.constant 0 : i32
    %c0_i32_0 = arith.constant 0 : i32
    return %arg0, %c0_i32 : i32, i32
  }
  func.func @transform_1(%arg0: i32) -> (i32, i32) {
    %c0_i32 = arith.constant 0 : i32
    %c0_i32_0 = arith.constant 0 : i32
    %c0_i32_1 = arith.constant 0 : i32
    return %c0_i32, %c0_i32_0 : i32, i32
  }
  func.func @transform_2(%arg0: i32) -> (i32, i32) {
    %c0_i32 = arith.constant 0 : i32
    %c0_i32_0 = arith.constant 0 : i32
    return %arg0, %c0_i32 : i32, i32
  }
  func.func @transform_3(%arg0: i32) -> (i32, i32) {
    %c0_i32 = arith.constant 0 : i32
    %c0_i32_0 = arith.constant 0 : i32
    return %arg0, %c0_i32 : i32, i32
  }
}

module attributes {stable_mosaic.version = 11 : i64} {
  func.func @_gemm_kernel_resident(%arg0: i32, %arg1: memref<16x384xbf16, #tpu.memory_space<vmem>>, %arg2: memref<384x128xbf16, #tpu.memory_space<vmem>>, %arg3: memref<16x128xbf16, #tpu.memory_space<vmem>>) attributes {dimension_semantics = [#tpu.dimension_semantics<parallel>], iteration_bounds = array<i64: 2>, scalar_prefetch = 0 : i64, scratch_operands = 0 : i64, tpu.core_type = #tpu.core_type<tc>, window_params = [{transform_indices = @transform_0, window_bounds = array<i64: 16, 384>}, {pipeline_mode = #tpu.pipeline_mode<synchronous>, transform_indices = @transform_1, window_bounds = array<i64: 384, 128>}, {transform_indices = @transform_2, window_bounds = array<i64: 16, 128>}]} {
    %c0 = arith.constant 0 : index
    %c0_0 = arith.constant 0 : index
    %0 = vector.load %arg1[%c0, %c0_0] : memref<16x384xbf16, #tpu.memory_space<vmem>>, vector<16x384xbf16>
    %cst = arith.constant 0.000000e+00 : bf16
    %1 = vector.broadcast %cst : bf16 to vector<16x384xbf16>
    %2 = arith.maximumf %0, %1 : vector<16x384xbf16>
    %c0_1 = arith.constant 0 : index
    %c0_2 = arith.constant 0 : index
    %3 = vector.load %arg2[%c0_1, %c0_2] : memref<384x128xbf16, #tpu.memory_space<vmem>>, vector<384x128xbf16>
    %cst_3 = arith.constant dense<0.000000e+00> : vector<16x128xf32>
    %4 = tpu.matmul %2, %3, %cst_3 {dimension_numbers = #tpu.dot_dimension_numbers<[1], [0], [0], [1], [0, 0, 1, 1], [], []>} : vector<16x384xbf16>, vector<384x128xbf16>, vector<16x128xf32> -> vector<16x128xf32>
    %5 = arith.truncf %4 : vector<16x128xf32> to vector<16x128xbf16>
    %c0_4 = arith.constant 0 : index
    %c0_5 = arith.constant 0 : index
    %6 = vector.load %arg3[%c0_4, %c0_5] : memref<16x128xbf16, #tpu.memory_space<vmem>>, vector<16x128xbf16>
    tpu.vector_store %arg3[%c0_4, %c0_5], %5 {strides = array<i32>} : memref<16x128xbf16, #tpu.memory_space<vmem>>, vector<16x128xbf16>,
    return
  }
  func.func @transform_0(%arg0: i32) -> (i32, i32) {
    %c0_i32 = arith.constant 0 : i32
    %c0_i32_0 = arith.constant 0 : i32
    return %arg0, %c0_i32 : i32, i32
  }
  func.func @transform_1(%arg0: i32) -> (i32, i32) {
    %c0_i32 = arith.constant 0 : i32
    %c0_i32_0 = arith.constant 0 : i32
    %c0_i32_1 = arith.constant 0 : i32
    return %c0_i32, %c0_i32_0 : i32, i32
  }
  func.func @transform_2(%arg0: i32) -> (i32, i32) {
    %c0_i32 = arith.constant 0 : i32
    %c0_i32_0 = arith.constant 0 : i32
    return %arg0, %c0_i32 : i32, i32
  }
}

module attributes {stable_mosaic.version = 11 : i64} {
  func.func @_gemm_kernel_resident(%arg0: i32, %arg1: memref<16x640xbf16, #tpu.memory_space<vmem>>, %arg2: memref<640x128xbf16, #tpu.memory_space<vmem>>, %arg3: memref<16x128xbf16, #tpu.memory_space<vmem>>, %arg4: memref<16x128xbf16, #tpu.memory_space<vmem>>) attributes {dimension_semantics = [#tpu.dimension_semantics<parallel>], iteration_bounds = array<i64: 2>, scalar_prefetch = 0 : i64, scratch_operands = 0 : i64, tpu.core_type = #tpu.core_type<tc>, window_params = [{transform_indices = @transform_0, window_bounds = array<i64: 16, 640>}, {pipeline_mode = #tpu.pipeline_mode<synchronous>, transform_indices = @transform_1, window_bounds = array<i64: 640, 128>}, {transform_indices = @transform_2, window_bounds = array<i64: 16, 128>}, {transform_indices = @transform_3, window_bounds = array<i64: 16, 128>}]} {
    %c0 = arith.constant 0 : index
    %c0_0 = arith.constant 0 : index
    %0 = vector.load %arg1[%c0, %c0_0] : memref<16x640xbf16, #tpu.memory_space<vmem>>, vector<16x640xbf16>
    %cst = arith.constant 0.000000e+00 : bf16
    %1 = vector.broadcast %cst : bf16 to vector<16x640xbf16>
    %2 = arith.maximumf %0, %1 : vector<16x640xbf16>
    %c0_1 = arith.constant 0 : index
    %c0_2 = arith.constant 0 : index
    %3 = vector.load %arg2[%c0_1, %c0_2] : memref<640x128xbf16, #tpu.memory_space<vmem>>, vector<640x128xbf16>
    %cst_3 = arith.constant dense<0.000000e+00> : vector<16x128xf32>
    %4 = tpu.matmul %2, %3, %cst_3 {dimension_numbers = #tpu.dot_dimension_numbers<[1], [0], [0], [1], [0, 0, 1, 1], [], []>} : vector<16x640xbf16>, vector<640x128xbf16>, vector<16x128xf32> -> vector<16x128xf32>
    %c0_4 = arith.constant 0 : index
    %c0_5 = arith.constant 0 : index
    %5 = vector.load %arg3[%c0_4, %c0_5] : memref<16x128xbf16, #tpu.memory_space<vmem>>, vector<16x128xbf16>
    %6 = arith.extf %5 : vector<16x128xbf16> to vector<16x128xf32>
    %7 = arith.addf %4, %6 : vector<16x128xf32>
    %8 = arith.truncf %7 : vector<16x128xf32> to vector<16x128xbf16>
    %c0_6 = arith.constant 0 : index
    %c0_7 = arith.constant 0 : index
    %9 = vector.load %arg4[%c0_6, %c0_7] : memref<16x128xbf16, #tpu.memory_space<vmem>>, vector<16x128xbf16>
    tpu.vector_store %arg4[%c0_6, %c0_7], %8 {strides = array<i32>} : memref<16x128xbf16, #tpu.memory_space<vmem>>, vector<16x128xbf16>,
    return
  }
  func.func @transform_0(%arg0: i32) -> (i32, i32) {
    %c0_i32 = arith.constant 0 : i32
    %c0_i32_0 = arith.constant 0 : i32
    return %arg0, %c0_i32 : i32, i32
  }
  func.func @transform_1(%arg0: i32) -> (i32, i32) {
    %c0_i32 = arith.constant 0 : i32
    %c0_i32_0 = arith.constant 0 : i32
    %c0_i32_1 = arith.constant 0 : i32
    return %c0_i32, %c0_i32_0 : i32, i32
  }
  func.func @transform_2(%arg0: i32) -> (i32, i32) {
    %c0_i32 = arith.constant 0 : i32
    %c0_i32_0 = arith.constant 0 : i32
    return %arg0, %c0_i32 : i32, i32
  }
  func.func @transform_3(%arg0: i32) -> (i32, i32) {
    %c0_i32 = arith.constant 0 : i32
    %c0_i32_0 = arith.constant 0 : i32
    return %arg0, %c0_i32 : i32, i32
  }
}

module attributes {stable_mosaic.version = 11 : i64} {
  func.func @_gemm_kernel_resident(%arg0: i32, %arg1: memref<16x128xbf16, #tpu.memory_space<vmem>>, %arg2: memref<128x128xbf16, #tpu.memory_space<vmem>>, %arg3: memref<16x128xf32, #tpu.memory_space<vmem>>) attributes {dimension_semantics = [#tpu.dimension_semantics<parallel>], iteration_bounds = array<i64: 2>, scalar_prefetch = 0 : i64, scratch_operands = 0 : i64, tpu.core_type = #tpu.core_type<tc>, window_params = [{transform_indices = @transform_0, window_bounds = array<i64: 16, 128>}, {pipeline_mode = #tpu.pipeline_mode<synchronous>, transform_indices = @transform_1, window_bounds = array<i64: 128, 128>}, {transform_indices = @transform_2, window_bounds = array<i64: 16, 128>}]} {
    %c0 = arith.constant 0 : index
    %c0_0 = arith.constant 0 : index
    %0 = vector.load %arg1[%c0, %c0_0] : memref<16x128xbf16, #tpu.memory_space<vmem>>, vector<16x128xbf16>
    %cst = arith.constant 0.000000e+00 : bf16
    %1 = vector.broadcast %cst : bf16 to vector<16x128xbf16>
    %2 = arith.maximumf %0, %1 : vector<16x128xbf16>
    %c0_1 = arith.constant 0 : index
    %c0_2 = arith.constant 0 : index
    %3 = vector.load %arg2[%c0_1, %c0_2] : memref<128x128xbf16, #tpu.memory_space<vmem>>, vector<128x128xbf16>
    %cst_3 = arith.constant dense<0.000000e+00> : vector<16x128xf32>
    %4 = tpu.matmul %2, %3, %cst_3 {dimension_numbers = #tpu.dot_dimension_numbers<[1], [0], [0], [1], [0, 0, 1, 1], [], []>} : vector<16x128xbf16>, vector<128x128xbf16>, vector<16x128xf32> -> vector<16x128xf32>
    %c0_4 = arith.constant 0 : index
    %c0_5 = arith.constant 0 : index
    %5 = vector.load %arg3[%c0_4, %c0_5] : memref<16x128xf32, #tpu.memory_space<vmem>>, vector<16x128xf32>
    tpu.vector_store %arg3[%c0_4, %c0_5], %4 {strides = array<i32>} : memref<16x128xf32, #tpu.memory_space<vmem>>, vector<16x128xf32>,
    return
  }
  func.func @transform_0(%arg0: i32) -> (i32, i32) {
    %c0_i32 = arith.constant 0 : i32
    %c0_i32_0 = arith.constant 0 : i32
    return %arg0, %c0_i32 : i32, i32
  }
  func.func @transform_1(%arg0: i32) -> (i32, i32) {
    %c0_i32 = arith.constant 0 : i32
    %c0_i32_0 = arith.constant 0 : i32
    %c0_i32_1 = arith.constant 0 : i32
    return %c0_i32, %c0_i32_0 : i32, i32
  }
  func.func @transform_2(%arg0: i32) -> (i32, i32) {
    %c0_i32 = arith.constant 0 : i32
    %c0_i32_0 = arith.constant 0 : i32
    return %arg0, %c0_i32 : i32, i32
  }
}

</mosaic_0001>

<bundles_post_ra>
// kernel: wrn_mcdonnell_forward.8
= control target key start
LH: loop header
LB: loop body
LE: loop exit
PB: predicated region body
PF: predicated region fallthrough
CT: control target
= control target key end

     0   :  { %s1054_s9 = smov 0   ;;  %s1138_s0 = inlined_call_operand.vmem [shape: bf16[512,128], index: 0, kind: input, shape index: {}]   ;;  %s1139_s1 = inlined_call_operand.vmem [shape: bf16[128,128], index: 1, kind: input, shape index: {}]   ;;  %s1140_s2 = inlined_call_operand.vmem [shape: bf16[512,128], index: 2, kind: output, shape index: {}]  }
   0x1 LB: > { %s717_s10 = sadd.s32 4294967295, %s1037_s9   ;;  %p721_p0 = scmp.ge.s32.totalorder %s1037_s9, 1  ;;  %s1037_s9 = sphi %s1054_s9, %s12_s9  }
   0x2   : > { %p113_p1 = scmp.lt.s32.totalorder %s1037_s9, 3 }
   0x4   : > { %p114_p2 = pnand %p721_p0, %p113_p1 }
   0x5   : > { %v1007_v0 = vld [vmem:[%s1139_s1] sm:$0xff] (!%p114_p2)   ;;  %s722_s13 = sshll.u32 (!%p114_p2), %s717_s10, 5  ;;  %v1008_v1 = vld [vmem:[%s1139_s1 + $0x8] sm:$0xff] (!%p114_p2)   ;;  %v1009_v2 = vld [vmem:[%s1139_s1 + $0x10] sm:$0xff] (!%p114_p2)  }
   0x6   : > { %117 = sbr.rel (%p114_p2) target bundleno = 280 (0x118), region = 28  ;;  %p136_p3 = scmp.lt.s32.totalorder (!%p114_p2), %s722_s13, 63  ;;  %935 = vmatprep.subr.bf16.mxu0 (!%p114_p2), %v1007_v0  ;;  %983 = vmatprep.subr.bf16.mxu1 (!%p114_p2), %v1007_v0  ;;  %v1010_v3 = vld [vmem:[%s1139_s1 + $0x18] sm:$0xff] (!%p114_p2)   ;;  %v1011_v6 = vld [vmem:[%s1139_s1 + $0x20] sm:$0xff] (!%p114_p2)   ;;  %v1012_v7 = vld [vmem:[%s1139_s1 + $0x28] sm:$0xff] (!%p114_p2)  }
   0x7   : > { %936 = vmatpush3.bf16.msra.mxu0 (!%p114_p2), %v1007_v0  ;;  %991 = vmatpush3.bf16.msra.mxu1 (!%p114_p2), %v1007_v0  ;;  %v1013_v8 = vld [vmem:[%s1139_s1 + $0x30] sm:$0xff] (!%p114_p2)   ;;  %v1014_v9 = vld [vmem:[%s1139_s1 + $0x38] sm:$0xff] (!%p114_p2)  }
   0x8   : > { %937 = vmatprep.subr.bf16.mxu0 (!%p114_p2), %v1008_v1  ;;  %984 = vmatprep.subr.bf16.mxu1 (!%p114_p2), %v1008_v1 }
   0xb   : > { %938 = vmatpush3.bf16.msra.mxu0 (!%p114_p2), %v1008_v1  ;;  %992 = vmatpush3.bf16.msra.mxu1 (!%p114_p2), %v1008_v1 }
   0xc   : > { %939 = vmatprep.subr.bf16.mxu0 (!%p114_p2), %v1009_v2  ;;  %985 = vmatprep.subr.bf16.mxu1 (!%p114_p2), %v1009_v2 }
   0xd   : > { %s1142_s13 = smov (!%p136_p3, %s722_s13), 63 }
   0xe   : > { %s723_s18 = sshll.u32 %s1142_s13, 2 }
   0xf   : > { %s1079_s21 = scalar_lea.vmem %s1138_s0, %s723_s18  ;;  %940 = vmatpush3.bf16.msra.mxu0 %v1009_v2  ;;  %993 = vmatpush3.bf16.msra.mxu1 %v1009_v2  ;;  %s1117_s6 = scalar_lea.vmem %s1140_s2, %s723_s18 }
  0x10   : > { %v1015_v4 = vld [vmem:[%s1079_s21] sm:$0xff]   ;;  %941 = vmatprep.subr.bf16.mxu0 %v1010_v3  ;;  %986 = vmatprep.subr.bf16.mxu1 %v1010_v3  ;;  %v1017_v10 = vld [vmem:[%s1079_s21 + $0x8] sm:$0xff]   ;;  %v1019_v12 = vld [vmem:[%s1079_s21 + $0x10] sm:$0xff]  }
  0x11   : > { %v1016_v5 = vld [vmem:[%s1079_s21 + $0x40] sm:$0xff]   ;;  %951 = vmatprep.mubr.bf16.mxu0 %v1015_v4  ;;  %v1018_v11 = vld [vmem:[%s1079_s21 + $0x48] sm:$0xff]   ;;  %v1020_v13 = vld [vmem:[%s1079_s21 + $0x50] sm:$0xff]  }
  0x12   : > { %967 = vmatprep.mubr.bf16.mxu1 %v1016_v5  ;;  %v1021_v14 = vld [vmem:[%s1079_s21 + $0x18] sm:$0xff]   ;;  %v1023_v16 = vld [vmem:[%s1079_s21 + $0x20] sm:$0xff]   ;;  %v1025_v18 = vld [vmem:[%s1079_s21 + $0x28] sm:$0xff]  }
  0x13   : > { %942 = vmatpush3.bf16.msra.mxu0 %v1010_v3  ;;  %994 = vmatpush3.bf16.msra.mxu1 %v1010_v3  ;;  %v1022_v15 = vld [vmem:[%s1079_s21 + $0x58] sm:$0xff]   ;;  %v1024_v17 = vld [vmem:[%s1079_s21 + $0x60] sm:$0xff]   ;;  %v1026_v19 = vld [vmem:[%s1079_s21 + $0x68] sm:$0xff]  }
  0x14   : > { %943 = vmatprep.subr.bf16.mxu0 %v1011_v6  ;;  %987 = vmatprep.subr.bf16.mxu1 %v1011_v6  ;;  %v1027_v20 = vld [vmem:[%s1079_s21 + $0x30] sm:$0xff]   ;;  %v1029_v22 = vld [vmem:[%s1079_s21 + $0x38] sm:$0xff]  }
  0x15   : > { %v1028_v21 = vld [vmem:[%s1079_s21 + $0x70] sm:$0xff]   ;;  %v1030_v23 = vld [vmem:[%s1079_s21 + $0x78] sm:$0xff]  }
  0x17   : > { %944 = vmatpush3.bf16.msra.mxu0 %v1011_v6  ;;  %995 = vmatpush3.bf16.msra.mxu1 %v1011_v6 }
  0x18   : > { %945 = vmatprep.subr.bf16.mxu0 %v1012_v7  ;;  %988 = vmatprep.subr.bf16.mxu1 %v1012_v7 }
  0x1b   : > { %946 = vmatpush3.bf16.msra.mxu0 %v1012_v7  ;;  %996 = vmatpush3.bf16.msra.mxu1 %v1012_v7 }
  0x1c   : > { %947 = vmatprep.subr.bf16.mxu0 %v1013_v8  ;;  %989 = vmatprep.subr.bf16.mxu1 %v1013_v8 }
  0x1f   : > { %948 = vmatpush3.bf16.msra.mxu0 %v1013_v8  ;;  %997 = vmatpush3.bf16.msra.mxu1 %v1013_v8 }
  0x20   : > { %949 = vmatprep.subr.bf16.mxu0 %v1014_v9  ;;  %990 = vmatprep.subr.bf16.mxu1 %v1014_v9 }
  0x23   : > { %950 = vmatpush3.bf16.msra.mxu0 %v1014_v9  ;;  %998 = vmatpush3.bf16.msra.mxu1 %v1014_v9 }
  0x26   : > { %952 = vmatmul.mubr.bf16.vlgmr.msra.gmra.mrb[0].mxu0 %v1017_v10  ;;  %968 = vmatmul.mubr.bf16.vlgmr.msra.gmra.mrb[0].mxu1 %v1018_v11 }
  0x27   : > { %955 = vmatprep.mubr.bf16.mxu0 %v1019_v12  ;;  %971 = vmatprep.mubr.bf16.mxu1 %v1020_v13 }
  0x2e   : > { %956 = vmatmul.mubr.bf16.gmra.mrb[4].mxu0 %v1021_v14  ;;  %972 = vmatmul.mubr.bf16.gmra.mrb[4].mxu1 %v1022_v15 }
  0x2f   : > { %959 = vmatprep.mubr.bf16.mxu0 %v1023_v16  ;;  %975 = vmatprep.mubr.bf16.mxu1 %v1024_v17 }
  0x36   : > { %960 = vmatmul.mubr.bf16.gmra.mrb[8].mxu0 %v1025_v18  ;;  %976 = vmatmul.mubr.bf16.gmra.mrb[8].mxu1 %v1026_v19 }
  0x37   : > { %963 = vmatprep.mubr.bf16.mxu0 %v1027_v20  ;;  %979 = vmatprep.mubr.bf16.mxu1 %v1028_v21 }
  0x3e   : > { %964 = vmatmul.mubr.bf16.gmra.mrb[12].mxu0 %v1029_v22  ;;  %980 = vmatmul.mubr.bf16.gmra.mrb[12].mxu1 %v1030_v23 }
  0xf9   : > { %v953_v24 = vpop.f32.mrb[0].mxu0  ;;  %v969_v25 = vpop.f32.mrb[0].mxu1 }
  0xfa   : > { %v374_v26 = vpop.f32.mrb[1].mxu0  ;;  %v438_v27 = vpop.f32.mrb[1].mxu1 }
  0xfb   : > { %v954_v28 = vpop.f32.mrb[2].mxu0  ;;  %v970_v29 = vpop.f32.mrb[2].mxu1 }
  0xfc   : > { %v824_v30 = vpack.c.bf16 %v954_v28, %v953_v24  ;;  %v864_v31 = vpack.c.bf16 %v970_v29, %v969_v25  ;;  %v377_v32 = vpop.f32.mrb[3].mxu0  ;;  %v441_v33 = vpop.f32.mrb[3].mxu1 }
  0xfd   : > { %v819_v34 = vpack.c.bf16 %v377_v32, %v374_v26  ;;  %v859_v35 = vpack.c.bf16 %v441_v33, %v438_v27 }
  0xfe   : > { %896 = vst [vmem:[%s1117_s6 + $0x8] sm:$0xff] %v824_v30   ;;  %904 = vst [vmem:[%s1117_s6 + $0x48] sm:$0xff] %v864_v31  }
  0xff   : > { %820 = vst [vmem:[%s1117_s6] sm:$0xff] %v819_v34   ;;  %903 = vst [vmem:[%s1117_s6 + $0x40] sm:$0xff] %v859_v35  }
 0x101   : > { %v957_v36 = vpop.f32.mrb[4].mxu0  ;;  %v973_v37 = vpop.f32.mrb[4].mxu1 }
 0x102   : > { %v390_v38 = vpop.f32.mrb[5].mxu0  ;;  %v454_v39 = vpop.f32.mrb[5].mxu1 }
 0x103   : > { %v958_v40 = vpop.f32.mrb[6].mxu0  ;;  %v974_v41 = vpop.f32.mrb[6].mxu1 }
 0x104   : > { %v834_v42 = vpack.c.bf16 %v958_v40, %v957_v36  ;;  %v874_v43 = vpack.c.bf16 %v974_v41, %v973_v37  ;;  %v393_v44 = vpop.f32.mrb[7].mxu0  ;;  %v457_v45 = vpop.f32.mrb[7].mxu1 }
 0x105   : > { %v829_v46 = vpack.c.bf16 %v393_v44, %v390_v38  ;;  %v869_v47 = vpack.c.bf16 %v457_v45, %v454_v39 }
 0x106   : > { %898 = vst [vmem:[%s1117_s6 + $0x18] sm:$0xff] %v834_v42   ;;  %906 = vst [vmem:[%s1117_s6 + $0x58] sm:$0xff] %v874_v43  }
 0x107   : > { %897 = vst [vmem:[%s1117_s6 + $0x10] sm:$0xff] %v829_v46   ;;  %905 = vst [vmem:[%s1117_s6 + $0x50] sm:$0xff] %v869_v47  }
 0x109   : > { %v961_v48 = vpop.f32.mrb[8].mxu0  ;;  %v977_v49 = vpop.f32.mrb[8].mxu1 }
 0x10a   : > { %v406_v50 = vpop.f32.mrb[9].mxu0  ;;  %v470_v51 = vpop.f32.mrb[9].mxu1 }
 0x10b   : > { %v962_v52 = vpop.f32.mrb[10].mxu0  ;;  %v978_v53 = vpop.f32.mrb[10].mxu1 }
 0x10c   : > { %v844_v54 = vpack.c.bf16 %v962_v52, %v961_v48  ;;  %v884_v55 = vpack.c.bf16 %v978_v53, %v977_v49  ;;  %v409_v56 = vpop.f32.mrb[11].mxu0  ;;  %v473_v57 = vpop.f32.mrb[11].mxu1 }
 0x10d   : > { %v839_v58 = vpack.c.bf16 %v409_v56, %v406_v50  ;;  %v879_v59 = vpack.c.bf16 %v473_v57, %v470_v51 }
 0x10e   : > { %900 = vst [vmem:[%s1117_s6 + $0x28] sm:$0xff] %v844_v54   ;;  %908 = vst [vmem:[%s1117_s6 + $0x68] sm:$0xff] %v884_v55  }
 0x10f   : > { %899 = vst [vmem:[%s1117_s6 + $0x20] sm:$0xff] %v839_v58   ;;  %907 = vst [vmem:[%s1117_s6 + $0x60] sm:$0xff] %v879_v59  }
 0x111   : > { %v965_v60 = vpop.f32.mrb[12].mxu0  ;;  %v981_v61 = vpop.f32.mrb[12].mxu1 }
 0x112   : > { %v422_v62 = vpop.f32.mrb[13].mxu0  ;;  %v486_v63 = vpop.f32.mrb[13].mxu1 }
 0x113   : > { %v966_v0 = vpop.f32.mrb[14].mxu0  ;;  %v982_v1 = vpop.f32.mrb[14].mxu1 }
 0x114   : > { %v854_v2 = vpack.c.bf16 %v966_v0, %v965_v60  ;;  %v894_v3 = vpack.c.bf16 %v982_v1, %v981_v61  ;;  %v425_v4 = vpop.f32.mrb[15].mxu0  ;;  %v489_v5 = vpop.f32.mrb[15].mxu1 }
 0x115   : > { %v849_v6 = vpack.c.bf16 %v425_v4, %v422_v62  ;;  %v889_v7 = vpack.c.bf16 %v489_v5, %v486_v63 }
 0x116   : > { %902 = vst [vmem:[%s1117_s6 + $0x38] sm:$0xff] %v854_v2   ;;  %910 = vst [vmem:[%s1117_s6 + $0x78] sm:$0xff] %v894_v3  }
 0x117   : > { %901 = vst [vmem:[%s1117_s6 + $0x30] sm:$0xff] %v849_v6   ;;  %909 = vst [vmem:[%s1117_s6 + $0x70] sm:$0xff] %v889_v7  }
 0x118 PF: > { %s12_s9 = sadd.s32 1, %s1037_s9  }
 0x119   : > { %p9_p4 = scmp.ge.s32.totalorder %s12_s9, 4  }
 0x11b   :  { %11 = sbr.rel (!%p9_p4) target bundleno = 1 (0x1), region = 58 }

// kernel: wrn_mcdonnell_forward.9
= control target key start
LH: loop header
LB: loop body
LE: loop exit
PB: predicated region body
PF: predicated region fallthrough
CT: control target
= control target key end

     0   :  { %s1277_s9 = smov 0   ;;  %s1430_s0 = inlined_call_operand.vmem [shape: bf16[512,256], index: 0, kind: input, shape index: {}]   ;;  %s1431_s1 = inlined_call_operand.vmem [shape: bf16[256,128], index: 1, kind: input, shape index: {}]   ;;  %s1432_s2 = inlined_call_operand.vmem [shape: bf16[512,128], index: 2, kind: output, shape index: {}]  }
   0x1 LB: > { %s880_s10 = sadd.s32 4294967295, %s1259_s9   ;;  %p884_p0 = scmp.ge.s32.totalorder %s1259_s9, 1  ;;  %s1259_s9 = sphi %s1277_s9, %s12_s9  }
   0x2   : > { %p114_p1 = scmp.lt.s32.totalorder %s1259_s9, 3 }
   0x4   : > { %p115_p2 = pnand %p884_p0, %p114_p1 }
   0x5   : > { %v1237_v0 = vld [vmem:[%s1431_s1 + $0x40] sm:$0xff] (!%p115_p2)   ;;  %s885_s13 = sshll.u32 (!%p115_p2), %s880_s10, 5  ;;  %v1239_v2 = vld [vmem:[%s1431_s1 + $0x48] sm:$0xff] (!%p115_p2)   ;;  %v1241_v4 = vld [vmem:[%s1431_s1 + $0x50] sm:$0xff] (!%p115_p2)   ;;  %v1261_v14 = vmov (!%p115_p2), 0  }
   0x6   : > { %118 = sbr.rel (%p115_p2) target bundleno = 314 (0x13a), region = 28  ;;  %v1238_v1 = vld [vmem:[%s1431_s1] sm:$0xff] (!%p115_p2)   ;;  %1100 = vmatprep.subr.bf16.mxu0 (!%p115_p2), %v1237_v0  ;;  %1212 = vmatprep.subr.bf16.mxu1 (!%p115_p2), %v1237_v0  ;;  %p138_p3 = scmp.lt.s32.totalorder (!%p115_p2), %s885_s13, 63  ;;  %v1240_v3 = vld [vmem:[%s1431_s1 + $0x8] sm:$0xff] (!%p115_p2)   ;;  %v1242_v5 = vld [vmem:[%s1431_s1 + $0x10] sm:$0xff] (!%p115_p2)  }
   0x7   : > { %1101 = vmatpush3.bf16.msra.mxu0 (!%p115_p2), %v1238_v1  ;;  %1220 = vmatpush3.bf16.msra.mxu1 (!%p115_p2), %v1238_v1  ;;  %v1243_v6 = vld [vmem:[%s1431_s1 + $0x58] sm:$0xff] (!%p115_p2)   ;;  %v1245_v8 = vld [vmem:[%s1431_s1 + $0x60] sm:$0xff] (!%p115_p2)   ;;  %v1247_v10 = vld [vmem:[%s1431_s1 + $0x68] sm:$0xff] (!%p115_p2)  }
   0x8   : > { %1102 = vmatprep.subr.bf16.mxu0 (!%p115_p2), %v1239_v2  ;;  %1213 = vmatprep.subr.bf16.mxu1 (!%p115_p2), %v1239_v2  ;;  %v1244_v7 = vld [vmem:[%s1431_s1 + $0x18] sm:$0xff] (!%p115_p2)   ;;  %v1246_v9 = vld [vmem:[%s1431_s1 + $0x20] sm:$0xff] (!%p115_p2)   ;;  %v1248_v20 = vld [vmem:[%s1431_s1 + $0x28] sm:$0xff] (!%p115_p2)  }
   0x9   : > { %v1249_v22 = vld [vmem:[%s1431_s1 + $0x70] sm:$0xff] (!%p115_p2)   ;;  %v1251_v25 = vld [vmem:[%s1431_s1 + $0x78] sm:$0xff] (!%p115_p2)  }
   0xa   : > { %v1250_v24 = vld [vmem:[%s1431_s1 + $0x30] sm:$0xff] (!%p115_p2)   ;;  %v1252_v31 = vld [vmem:[%s1431_s1 + $0x38] sm:$0xff] (!%p115_p2)  }
   0xb   : > { %1103 = vmatpush3.bf16.msra.mxu0 (!%p115_p2), %v1240_v3  ;;  %1221 = vmatpush3.bf16.msra.mxu1 (!%p115_p2), %v1240_v3 }
   0xc   : > { %1104 = vmatprep.subr.bf16.mxu0 (!%p115_p2), %v1241_v4  ;;  %1214 = vmatprep.subr.bf16.mxu1 (!%p115_p2), %v1241_v4 }
   0xd   : > { %s1434_s13 = smov (!%p138_p3, %s885_s13), 63 }
   0xe   : > { %s972_s26 = sshll.u32 %s1434_s13, 3  ;;  %s889_s22 = sshll.u32 %s1434_s13, 2 }
   0xf   : > { %1105 = vmatpush3.bf16.msra.mxu0 %v1242_v5  ;;  %1222 = vmatpush3.bf16.msra.mxu1 %v1242_v5  ;;  %s1318_s5 = scalar_lea.vmem %s1430_s0, %s972_s26  ;;  %s1409_s25 = scalar_lea.vmem %s1432_s2, %s889_s22 }
  0x10   : > { %1106 = vmatprep.subr.bf16.mxu0 %v1243_v6  ;;  %1215 = vmatprep.subr.bf16.mxu1 %v1243_v6  ;;  %v151_v11 = vld [vmem:[%s1318_s5] sm:$0xff]  ;;  %v152_v12 = vld [vmem:[%s1318_s5 + $0x8] sm:$0xff]  ;;  %v153_v26 = vld [vmem:[%s1318_s5 + $0x10] sm:$0xff] }
  0x11   : > { %v167_v13 = vld [vmem:[%s1318_s5 + $0x80] sm:$0xff]  ;;  %v183_v15 = vmax.bf16 %v1261_v14, %v151_v11  ;;  %v184_v16 = vmax.bf16 %v1261_v14, %v152_v12  ;;  %v168_v17 = vld [vmem:[%s1318_s5 + $0x88] sm:$0xff]  ;;  %v154_v27 = vld [vmem:[%s1318_s5 + $0x18] sm:$0xff]  ;;  %v185_v30 = vmax.bf16 %v1261_v14, %v153_v26 }
  0x12   : > { %v199_v18 = vmax.bf16 %v1261_v14, %v167_v13  ;;  %v200_v19 = vmax.bf16 %v1261_v14, %v168_v17  ;;  %v169_v28 = vld [vmem:[%s1318_s5 + $0x90] sm:$0xff]  ;;  %v170_v29 = vld [vmem:[%s1318_s5 + $0x98] sm:$0xff]  ;;  %v186_v32 = vmax.bf16 %v1261_v14, %v154_v27  ;;  %v155_v39 = vld [vmem:[%s1318_s5 + $0x20] sm:$0xff] }
  0x13   : > { %1107 = vmatpush3.bf16.msra.mxu0 %v1244_v7  ;;  %1223 = vmatpush3.bf16.msra.mxu1 %v1244_v7  ;;  %v891_v21 = vcombine.high %v183_v15, %v184_v16  ;;  %v201_v33 = vmax.bf16 %v1261_v14, %v169_v28  ;;  %v202_v34 = vmax.bf16 %v1261_v14, %v170_v29  ;;  %v156_v40 = vld [vmem:[%s1318_s5 + $0x28] sm:$0xff]  ;;  %v171_v41 = vld [vmem:[%s1318_s5 + $0xa0] sm:$0xff]  ;;  %v157_v51 = vld [vmem:[%s1318_s5 + $0x30] sm:$0xff] }
  0x14   : > { %1108 = vmatprep.subr.bf16.mxu0 %v1245_v8  ;;  %1216 = vmatprep.subr.bf16.mxu1 %v1245_v8  ;;  %v907_v23 = vcombine.high %v199_v18, %v200_v19  ;;  %v890_v35 = vcombine.low %v183_v15, %v184_v16  ;;  %v906_v36 = vcombine.low %v199_v18, %v200_v19  ;;  %v172_v42 = vld [vmem:[%s1318_s5 + $0xa8] sm:$0xff]  ;;  %v158_v52 = vld [vmem:[%s1318_s5 + $0x38] sm:$0xff]  ;;  %v173_v53 = vld [vmem:[%s1318_s5 + $0xb0] sm:$0xff] }
  0x15   : > { %535 = vmatprep.mubr.bf16.mxu0 %v891_v21  ;;  %v893_v37 = vcombine.high %v185_v30, %v186_v32  ;;  %v909_v38 = vcombine.high %v201_v33, %v202_v34  ;;  %v187_v43 = vmax.bf16 %v1261_v14, %v155_v39  ;;  %v188_v44 = vmax.bf16 %v1261_v14, %v156_v40  ;;  %v174_v54 = vld [vmem:[%s1318_s5 + $0xb8] sm:$0xff]  ;;  %v159_v63 = vld [vmem:[%s1318_s5 + $0x40] sm:$0xff]  ;;  %v160_v0 = vld [vmem:[%s1318_s5 + $0x48] sm:$0xff] }
  0x16   : > { %599 = vmatprep.mubr.bf16.mxu1 %v907_v23  ;;  %v203_v45 = vmax.bf16 %v1261_v14, %v171_v41  ;;  %v204_v46 = vmax.bf16 %v1261_v14, %v172_v42  ;;  %v892_v47 = vcombine.low %v185_v30, %v186_v32  ;;  %v908_v48 = vcombine.low %v201_v33, %v202_v34  ;;  %v175_v1 = vld [vmem:[%s1318_s5 + $0xc0] sm:$0xff]  ;;  %v176_v2 = vld [vmem:[%s1318_s5 + $0xc8] sm:$0xff]  ;;  %v161_v11 = vld [vmem:[%s1318_s5 + $0x50] sm:$0xff] }
  0x17   : > { %1109 = vmatpush3.bf16.msra.mxu0 %v1246_v9  ;;  %1224 = vmatpush3.bf16.msra.mxu1 %v1246_v9  ;;  %v895_v49 = vcombine.high %v187_v43, %v188_v44  ;;  %v189_v55 = vmax.bf16 %v1261_v14, %v157_v51  ;;  %v190_v56 = vmax.bf16 %v1261_v14, %v158_v52  ;;  %v162_v12 = vld [vmem:[%s1318_s5 + $0x58] sm:$0xff]  ;;  %v177_v13 = vld [vmem:[%s1318_s5 + $0xd0] sm:$0xff]  ;;  %v179_v26 = vld [vmem:[%s1318_s5 + $0xe0] sm:$0xff] }
  0x18   : > { %1110 = vmatprep.subr.bf16.mxu0 %v1247_v10  ;;  %1217 = vmatprep.subr.bf16.mxu1 %v1247_v10  ;;  %v911_v50 = vcombine.high %v203_v45, %v204_v46  ;;  %v205_v57 = vmax.bf16 %v1261_v14, %v173_v53  ;;  %v206_v58 = vmax.bf16 %v1261_v14, %v174_v54  ;;  %v178_v15 = vld [vmem:[%s1318_s5 + $0xd8] sm:$0xff]  ;;  %v180_v27 = vld [vmem:[%s1318_s5 + $0xe8] sm:$0xff] }
  0x19   : > { %v894_v59 = vcombine.low %v187_v43, %v188_v44  ;;  %v910_v60 = vcombine.low %v203_v45, %v204_v46  ;;  %v897_v61 = vcombine.high %v189_v55, %v190_v56  ;;  %v191_v3 = vmax.bf16 %v1261_v14, %v159_v63  ;;  %v182_v39 = vld [vmem:[%s1318_s5 + $0xf8] sm:$0xff] }
  0x1a   : > { %v913_v62 = vcombine.high %v205_v57, %v206_v58  ;;  %v192_v4 = vmax.bf16 %v1261_v14, %v160_v0  ;;  %v207_v5 = vmax.bf16 %v1261_v14, %v175_v1  ;;  %v208_v6 = vmax.bf16 %v1261_v14, %v176_v2 }
  0x1b   : > { %1111 = vmatpush3.bf16.msra.mxu0 %v1248_v20  ;;  %1225 = vmatpush3.bf16.msra.mxu1 %v1248_v20  ;;  %v896_v7 = vcombine.low %v189_v55, %v190_v56  ;;  %v912_v8 = vcombine.low %v205_v57, %v206_v58  ;;  %v193_v16 = vmax.bf16 %v1261_v14, %v161_v11 }
  0x1c   : > { %1112 = vmatprep.subr.bf16.mxu0 %v1249_v22  ;;  %1218 = vmatprep.subr.bf16.mxu1 %v1249_v22  ;;  %v899_v9 = vcombine.high %v191_v3, %v192_v4  ;;  %v915_v10 = vcombine.high %v207_v5, %v208_v6  ;;  %v194_v17 = vmax.bf16 %v1261_v14, %v162_v12 }
  0x1d   : > { %v209_v18 = vmax.bf16 %v1261_v14, %v177_v13  ;;  %v210_v19 = vmax.bf16 %v1261_v14, %v178_v15  ;;  %v898_v20 = vcombine.low %v191_v3, %v192_v4  ;;  %v914_v21 = vcombine.low %v207_v5, %v208_v6 }
  0x1e   : > { %v901_v22 = vcombine.high %v193_v16, %v194_v17  ;;  %v211_v30 = vmax.bf16 %v1261_v14, %v179_v26  ;;  %v900_v32 = vcombine.low %v193_v16, %v194_v17  ;;  %v214_v43 = vmax.bf16 %v1261_v14, %v182_v39 }
  0x1f   : > { %1113 = vmatpush3.bf16.msra.mxu0 %v1250_v24  ;;  %1226 = vmatpush3.bf16.msra.mxu1 %v1250_v24  ;;  %v917_v23 = vcombine.high %v209_v18, %v210_v19  ;;  %v163_v24 = vld [vmem:[%s1318_s5 + $0x60] sm:$0xff]  ;;  %v916_v33 = vcombine.low %v209_v18, %v210_v19 }
  0x20   : > { %1114 = vmatprep.subr.bf16.mxu0 %v1251_v25  ;;  %1219 = vmatprep.subr.bf16.mxu1 %v1251_v25  ;;  %v164_v25 = vld [vmem:[%s1318_s5 + $0x68] sm:$0xff]  ;;  %v195_v28 = vmax.bf16 %v1261_v14, %v163_v24 }
  0x21   : > { %v196_v29 = vmax.bf16 %v1261_v14, %v164_v25 }
  0x23   : > { %1115 = vmatpush3.bf16.msra.mxu0 %v1252_v31  ;;  %1227 = vmatpush3.bf16.msra.mxu1 %v1252_v31  ;;  %v212_v31 = vmax.bf16 %v1261_v14, %v180_v27  ;;  %v903_v34 = vcombine.high %v195_v28, %v196_v29  ;;  %v902_v44 = vcombine.low %v195_v28, %v196_v29 }
  0x25   : > { %v918_v45 = vcombine.low %v211_v30, %v212_v31 }
  0x26   : > { %536 = vmatmul.mubr.bf16.vlgmr.msra.gmra.mrb[0].mxu0 %v890_v35  ;;  %600 = vmatmul.mubr.bf16.vlgmr.msra.gmra.mrb[0].mxu1 %v906_v36  ;;  %v919_v35 = vcombine.high %v211_v30, %v212_v31  ;;  %v165_v36 = vld [vmem:[%s1318_s5 + $0x70] sm:$0xff] }
  0x27   : > { %543 = vmatprep.mubr.bf16.mxu0 %v893_v37  ;;  %607 = vmatprep.mubr.bf16.mxu1 %v909_v38  ;;  %v166_v37 = vld [vmem:[%s1318_s5 + $0x78] sm:$0xff]  ;;  %v181_v38 = vld [vmem:[%s1318_s5 + $0xf0] sm:$0xff]  ;;  %v197_v40 = vmax.bf16 %v1261_v14, %v165_v36 }
  0x28   : > { %v198_v41 = vmax.bf16 %v1261_v14, %v166_v37  ;;  %v213_v42 = vmax.bf16 %v1261_v14, %v181_v38 }
  0x2a   : > { %v905_v46 = vcombine.high %v197_v40, %v198_v41 }
  0x2e   : > { %544 = vmatmul.mubr.bf16.gmra.mrb[4].mxu0 %v892_v47  ;;  %608 = vmatmul.mubr.bf16.gmra.mrb[4].mxu1 %v908_v48  ;;  %v921_v47 = vcombine.high %v213_v42, %v214_v43  ;;  %v904_v48 = vcombine.low %v197_v40, %v198_v41 }
  0x2f   : > { %551 = vmatprep.mubr.bf16.mxu0 %v895_v49  ;;  %615 = vmatprep.mubr.bf16.mxu1 %v911_v50  ;;  %v920_v49 = vcombine.low %v213_v42, %v214_v43 }
  0x36   : > { %552 = vmatmul.mubr.bf16.gmra.mrb[8].mxu0 %v894_v59  ;;  %616 = vmatmul.mubr.bf16.gmra.mrb[8].mxu1 %v910_v60 }
  0x37   : > { %559 = vmatprep.mubr.bf16.mxu0 %v897_v61  ;;  %623 = vmatprep.mubr.bf16.mxu1 %v913_v62 }
  0x3e   : > { %560 = vmatmul.mubr.bf16.gmra.mrb[12].mxu0 %v896_v7  ;;  %624 = vmatmul.mubr.bf16.gmra.mrb[12].mxu1 %v912_v8 }
  0x3f   : > { %567 = vmatprep.mubr.bf16.mxu0 %v899_v9  ;;  %631 = vmatprep.mubr.bf16.mxu1 %v915_v10 }
  0x46   : > { %568 = vmatmul.mubr.bf16.gmra.mrb[16].mxu0 %v898_v20  ;;  %632 = vmatmul.mubr.bf16.gmra.mrb[16].mxu1 %v914_v21 }
  0x47   : > { %575 = vmatprep.mubr.bf16.mxu0 %v901_v22  ;;  %639 = vmatprep.mubr.bf16.mxu1 %v917_v23 }
  0x4e   : > { %576 = vmatmul.mubr.bf16.gmra.mrb[20].mxu0 %v900_v32  ;;  %640 = vmatmul.mubr.bf16.gmra.mrb[20].mxu1 %v916_v33 }
  0x4f   : > { %583 = vmatprep.mubr.bf16.mxu0 %v903_v34  ;;  %647 = vmatprep.mubr.bf16.mxu1 %v919_v35 }
  0x56   : > { %584 = vmatmul.mubr.bf16.gmra.mrb[24].mxu0 %v902_v44  ;;  %648 = vmatmul.mubr.bf16.gmra.mrb[24].mxu1 %v918_v45 }
  0x57   : > { %591 = vmatprep.mubr.bf16.mxu0 %v905_v46  ;;  %655 = vmatprep.mubr.bf16.mxu1 %v921_v47 }
  0x5e   : > { %592 = vmatmul.mubr.bf16.gmra.mrb[28].mxu0 %v904_v48  ;;  %656 = vmatmul.mubr.bf16.gmra.mrb[28].mxu1 %v920_v49 }
  0xf9   : > { %v1116_v50 = vpop.f32.mrb[0].mxu0  ;;  %v1164_v51 = vpop.f32.mrb[0].mxu1 }
  0xfa   : > { %v1117_v52 = vpop.f32.mrb[1].mxu0  ;;  %v1165_v53 = vpop.f32.mrb[1].mxu1 }
  0xfb   : > { %v1118_v54 = vadd.f32 %v1117_v52, %v1116_v50  ;;  %v1166_v55 = vadd.f32 %v1165_v53, %v1164_v51  ;;  %v1119_v14 = vpop.f32.mrb[2].mxu0  ;;  %v1167_v56 = vpop.f32.mrb[2].mxu1 }
  0xfc   : > { %v1120_v57 = vpop.f32.mrb[3].mxu0  ;;  %v1168_v58 = vpop.f32.mrb[3].mxu1 }
  0xfd   : > { %v1121_v59 = vadd.f32 %v1120_v57, %v1119_v14  ;;  %v1169_v60 = vadd.f32 %v1168_v58, %v1167_v56 }
  0xff   : > { %v1008_v61 = vpack.c.bf16 %v1121_v59, %v1118_v54  ;;  %v1048_v62 = vpack.c.bf16 %v1169_v60, %v1166_v55 }
 0x101   : > { %1009 = vst [vmem:[%s1409_s25] sm:$0xff] %v1008_v61   ;;  %1092 = vst [vmem:[%s1409_s25 + $0x40] sm:$0xff] %v1048_v62   ;;  %v1122_v63 = vpop.f32.mrb[4].mxu0  ;;  %v1170_v0 = vpop.f32.mrb[4].mxu1 }
 0x102   : > { %v1123_v1 = vpop.f32.mrb[5].mxu0  ;;  %v1171_v2 = vpop.f32.mrb[5].mxu1 }
 0x103   : > { %v1124_v3 = vadd.f32 %v1123_v1, %v1122_v63  ;;  %v1172_v4 = vadd.f32 %v1171_v2, %v1170_v0  ;;  %v1125_v5 = vpop.f32.mrb[6].mxu0  ;;  %v1173_v6 = vpop.f32.mrb[6].mxu1 }
 0x104   : > { %v1126_v7 = vpop.f32.mrb[7].mxu0  ;;  %v1174_v8 = vpop.f32.mrb[7].mxu1 }
 0x105   : > { %v1127_v9 = vadd.f32 %v1126_v7, %v1125_v5  ;;  %v1175_v10 = vadd.f32 %v1174_v8, %v1173_v6 }
 0x107   : > { %v1013_v11 = vpack.c.bf16 %v1127_v9, %v1124_v3  ;;  %v1053_v12 = vpack.c.bf16 %v1175_v10, %v1172_v4 }
 0x109   : > { %1085 = vst [vmem:[%s1409_s25 + $0x8] sm:$0xff] %v1013_v11   ;;  %1093 = vst [vmem:[%s1409_s25 + $0x48] sm:$0xff] %v1053_v12   ;;  %v1128_v13 = vpop.f32.mrb[8].mxu0  ;;  %v1176_v15 = vpop.f32.mrb[8].mxu1 }
 0x10a   : > { %v1129_v16 = vpop.f32.mrb[9].mxu0  ;;  %v1177_v17 = vpop.f32.mrb[9].mxu1 }
 0x10b   : > { %v1130_v18 = vadd.f32 %v1129_v16, %v1128_v13  ;;  %v1178_v19 = vadd.f32 %v1177_v17, %v1176_v15  ;;  %v1131_v20 = vpop.f32.mrb[10].mxu0  ;;  %v1179_v21 = vpop.f32.mrb[10].mxu1 }
 0x10c   : > { %v1132_v22 = vpop.f32.mrb[11].mxu0  ;;  %v1180_v23 = vpop.f32.mrb[11].mxu1 }
 0x10d   : > { %v1133_v24 = vadd.f32 %v1132_v22, %v1131_v20  ;;  %v1181_v25 = vadd.f32 %v1180_v23, %v1179_v21 }
 0x10f   : > { %v1018_v26 = vpack.c.bf16 %v1133_v24, %v1130_v18  ;;  %v1058_v27 = vpack.c.bf16 %v1181_v25, %v1178_v19 }
 0x111   : > { %1086 = vst [vmem:[%s1409_s25 + $0x10] sm:$0xff] %v1018_v26   ;;  %1094 = vst [vmem:[%s1409_s25 + $0x50] sm:$0xff] %v1058_v27   ;;  %v1134_v28 = vpop.f32.mrb[12].mxu0  ;;  %v1182_v29 = vpop.f32.mrb[12].mxu1 }
 0x112   : > { %v1135_v30 = vpop.f32.mrb[13].mxu0  ;;  %v1183_v31 = vpop.f32.mrb[13].mxu1 }
 0x113   : > { %v1136_v32 = vadd.f32 %v1135_v30, %v1134_v28  ;;  %v1184_v33 = vadd.f32 %v1183_v31, %v1182_v29  ;;  %v1137_v34 = vpop.f32.mrb[14].mxu0  ;;  %v1185_v35 = vpop.f32.mrb[14].mxu1 }
 0x114   : > { %v1138_v36 = vpop.f32.mrb[15].mxu0  ;;  %v1186_v37 = vpop.f32.mrb[15].mxu1 }
 0x115   : > { %v1139_v38 = vadd.f32 %v1138_v36, %v1137_v34  ;;  %v1187_v39 = vadd.f32 %v1186_v37, %v1185_v35 }
 0x117   : > { %v1023_v40 = vpack.c.bf16 %v1139_v38, %v1136_v32  ;;  %v1063_v41 = vpack.c.bf16 %v1187_v39, %v1184_v33 }
 0x119   : > { %1087 = vst [vmem:[%s1409_s25 + $0x18] sm:$0xff] %v1023_v40   ;;  %1095 = vst [vmem:[%s1409_s25 + $0x58] sm:$0xff] %v1063_v41   ;;  %v1140_v42 = vpop.f32.mrb[16].mxu0  ;;  %v1188_v43 = vpop.f32.mrb[16].mxu1 }
 0x11a   : > { %v1141_v44 = vpop.f32.mrb[17].mxu0  ;;  %v1189_v45 = vpop.f32.mrb[17].mxu1 }
 0x11b   : > { %v1142_v46 = vadd.f32 %v1141_v44, %v1140_v42  ;;  %v1190_v47 = vadd.f32 %v1189_v45, %v1188_v43  ;;  %v1143_v48 = vpop.f32.mrb[18].mxu0  ;;  %v1191_v49 = vpop.f32.mrb[18].mxu1 }
 0x11c   : > { %v1144_v50 = vpop.f32.mrb[19].mxu0  ;;  %v1192_v51 = vpop.f32.mrb[19].mxu1 }
 0x11d   : > { %v1145_v52 = vadd.f32 %v1144_v50, %v1143_v48  ;;  %v1193_v53 = vadd.f32 %v1192_v51, %v1191_v49 }
 0x11f   : > { %v1028_v54 = vpack.c.bf16 %v1145_v52, %v1142_v46  ;;  %v1068_v55 = vpack.c.bf16 %v1193_v53, %v1190_v47 }
 0x121   : > { %1088 = vst [vmem:[%s1409_s25 + $0x20] sm:$0xff] %v1028_v54   ;;  %1096 = vst [vmem:[%s1409_s25 + $0x60] sm:$0xff] %v1068_v55   ;;  %v1146_v14 = vpop.f32.mrb[20].mxu0  ;;  %v1194_v56 = vpop.f32.mrb[20].mxu1 }
 0x122   : > { %v1147_v57 = vpop.f32.mrb[21].mxu0  ;;  %v1195_v58 = vpop.f32.mrb[21].mxu1 }
 0x123   : > { %v1148_v59 = vadd.f32 %v1147_v57, %v1146_v14  ;;  %v1196_v60 = vadd.f32 %v1195_v58, %v1194_v56  ;;  %v1149_v61 = vpop.f32.mrb[22].mxu0  ;;  %v1197_v62 = vpop.f32.mrb[22].mxu1 }
 0x124   : > { %v1150_v63 = vpop.f32.mrb[23].mxu0  ;;  %v1198_v0 = vpop.f32.mrb[23].mxu1 }
 0x125   : > { %v1151_v1 = vadd.f32 %v1150_v63, %v1149_v61  ;;  %v1199_v2 = vadd.f32 %v1198_v0, %v1197_v62 }
 0x127   : > { %v1033_v3 = vpack.c.bf16 %v1151_v1, %v1148_v59  ;;  %v1073_v4 = vpack.c.bf16 %v1199_v2, %v1196_v60 }
 0x129   : > { %1089 = vst [vmem:[%s1409_s25 + $0x28] sm:$0xff] %v1033_v3   ;;  %1097 = vst [vmem:[%s1409_s25 + $0x68] sm:$0xff] %v1073_v4   ;;  %v1152_v5 = vpop.f32.mrb[24].mxu0  ;;  %v1200_v6 = vpop.f32.mrb[24].mxu1 }
 0x12a   : > { %v1153_v7 = vpop.f32.mrb[25].mxu0  ;;  %v1201_v8 = vpop.f32.mrb[25].mxu1 }
 0x12b   : > { %v1154_v9 = vadd.f32 %v1153_v7, %v1152_v5  ;;  %v1202_v10 = vadd.f32 %v1201_v8, %v1200_v6  ;;  %v1155_v11 = vpop.f32.mrb[26].mxu0  ;;  %v1203_v12 = vpop.f32.mrb[26].mxu1 }
 0x12c   : > { %v1156_v13 = vpop.f32.mrb[27].mxu0  ;;  %v1204_v15 = vpop.f32.mrb[27].mxu1 }
 0x12d   : > { %v1157_v16 = vadd.f32 %v1156_v13, %v1155_v11  ;;  %v1205_v17 = vadd.f32 %v1204_v15, %v1203_v12 }
 0x12f   : > { %v1038_v18 = vpack.c.bf16 %v1157_v16, %v1154_v9  ;;  %v1078_v19 = vpack.c.bf16 %v1205_v17, %v1202_v10 }
 0x131   : > { %1090 = vst [vmem:[%s1409_s25 + $0x30] sm:$0xff] %v1038_v18   ;;  %1098 = vst [vmem:[%s1409_s25 + $0x70] sm:$0xff] %v1078_v19   ;;  %v1158_v20 = vpop.f32.mrb[28].mxu0  ;;  %v1206_v21 = vpop.f32.mrb[28].mxu1 }
 0x132   : > { %v1159_v22 = vpop.f32.mrb[29].mxu0  ;;  %v1207_v23 = vpop.f32.mrb[29].mxu1 }
 0x133   : > { %v1160_v24 = vadd.f32 %v1159_v22, %v1158_v20  ;;  %v1208_v25 = vadd.f32 %v1207_v23, %v1206_v21  ;;  %v1161_v26 = vpop.f32.mrb[30].mxu0  ;;  %v1209_v27 = vpop.f32.mrb[30].mxu1 }
 0x134   : > { %v1162_v28 = vpop.f32.mrb[31].mxu0  ;;  %v1210_v29 = vpop.f32.mrb[31].mxu1 }
 0x135   : > { %v1163_v30 = vadd.f32 %v1162_v28, %v1161_v26  ;;  %v1211_v31 = vadd.f32 %v1210_v29, %v1209_v27 }
 0x137   : > { %v1043_v32 = vpack.c.bf16 %v1163_v30, %v1160_v24  ;;  %v1083_v33 = vpack.c.bf16 %v1211_v31, %v1208_v25 }
 0x139   : > { %1091 = vst [vmem:[%s1409_s25 + $0x38] sm:$0xff] %v1043_v32   ;;  %1099 = vst [vmem:[%s1409_s25 + $0x78] sm:$0xff] %v1083_v33  }
 0x13a PF: > { %s12_s9 = sadd.s32 1, %s1259_s9  }
 0x13b   : > { %p9_p4 = scmp.ge.s32.totalorder %s12_s9, 4  }
 0x13d   :  { %11 = sbr.rel (!%p9_p4) target bundleno = 1 (0x1), region = 58 }

// kernel: wrn_mcdonnell_forward.10
= control target key start
LH: loop header
LB: loop body
LE: loop exit
PB: predicated region body
PF: predicated region fallthrough
CT: control target
= control target key end

     0   :  { %s1488_s12 = smov 0   ;;  %s1662_s0 = inlined_call_operand.vmem [shape: bf16[512,256], index: 0, kind: input, shape index: {}]   ;;  %s1663_s1 = inlined_call_operand.vmem [shape: bf16[256,128], index: 1, kind: input, shape index: {}]   ;;  %s1664_s2 = inlined_call_operand.vmem [shape: bf16[512,128], index: 2, kind: input, shape index: {}]   ;;  %s1665_s3 = inlined_call_operand.vmem [shape: bf16[512,128], index: 3, kind: output, shape index: {}]  }
   0x1 LB: > { %s1005_s13 = sadd.s32 4294967295, %s1465_s12   ;;  %p1009_p0 = scmp.ge.s32.totalorder %s1465_s12, 1  ;;  %s1465_s12 = sphi %s1488_s12, %s13_s12  }
   0x2   : > { %p150_p1 = scmp.lt.s32.totalorder %s1465_s12, 3 }
   0x4   : > { %p151_p2 = pnand %p1009_p0, %p150_p1 }
   0x5   : > { %v1443_v0 = vld [vmem:[%s1663_s1 + $0x40] sm:$0xff] (!%p151_p2)   ;;  %s1010_s16 = sshll.u32 (!%p151_p2), %s1005_s13, 5  ;;  %v1445_v2 = vld [vmem:[%s1663_s1 + $0x48] sm:$0xff] (!%p151_p2)   ;;  %v1447_v4 = vld [vmem:[%s1663_s1 + $0x50] sm:$0xff] (!%p151_p2)   ;;  %v1467_v14 = vmov (!%p151_p2), 0  }
   0x6   : > { %154 = sbr.rel (%p151_p2) target bundleno = 316 (0x13c), region = 32  ;;  %v1444_v1 = vld [vmem:[%s1663_s1] sm:$0xff] (!%p151_p2)   ;;  %1306 = vmatprep.subr.bf16.mxu0 (!%p151_p2), %v1443_v0  ;;  %1418 = vmatprep.subr.bf16.mxu1 (!%p151_p2), %v1443_v0  ;;  %p181_p3 = scmp.lt.s32.totalorder (!%p151_p2), %s1010_s16, 63  ;;  %v1446_v3 = vld [vmem:[%s1663_s1 + $0x8] sm:$0xff] (!%p151_p2)   ;;  %v1448_v5 = vld [vmem:[%s1663_s1 + $0x10] sm:$0xff] (!%p151_p2)  }
   0x7   : > { %1307 = vmatpush3.bf16.msra.mxu0 (!%p151_p2), %v1444_v1  ;;  %1426 = vmatpush3.bf16.msra.mxu1 (!%p151_p2), %v1444_v1  ;;  %v1449_v6 = vld [vmem:[%s1663_s1 + $0x58] sm:$0xff] (!%p151_p2)   ;;  %v1451_v8 = vld [vmem:[%s1663_s1 + $0x60] sm:$0xff] (!%p151_p2)   ;;  %v1453_v10 = vld [vmem:[%s1663_s1 + $0x68] sm:$0xff] (!%p151_p2)  }
   0x8   : > { %1308 = vmatprep.subr.bf16.mxu0 (!%p151_p2), %v1445_v2  ;;  %1419 = vmatprep.subr.bf16.mxu1 (!%p151_p2), %v1445_v2  ;;  %v1450_v7 = vld [vmem:[%s1663_s1 + $0x18] sm:$0xff] (!%p151_p2)   ;;  %v1452_v9 = vld [vmem:[%s1663_s1 + $0x20] sm:$0xff] (!%p151_p2)   ;;  %v1454_v20 = vld [vmem:[%s1663_s1 + $0x28] sm:$0xff] (!%p151_p2)  }
   0x9   : > { %v1455_v22 = vld [vmem:[%s1663_s1 + $0x70] sm:$0xff] (!%p151_p2)   ;;  %v1457_v25 = vld [vmem:[%s1663_s1 + $0x78] sm:$0xff] (!%p151_p2)  }
   0xa   : > { %v1456_v24 = vld [vmem:[%s1663_s1 + $0x30] sm:$0xff] (!%p151_p2)   ;;  %v1458_v31 = vld [vmem:[%s1663_s1 + $0x38] sm:$0xff] (!%p151_p2)  }
   0xb   : > { %1309 = vmatpush3.bf16.msra.mxu0 (!%p151_p2), %v1446_v3  ;;  %1427 = vmatpush3.bf16.msra.mxu1 (!%p151_p2), %v1446_v3 }
   0xc   : > { %1310 = vmatprep.subr.bf16.mxu0 (!%p151_p2), %v1447_v4  ;;  %1420 = vmatprep.subr.bf16.mxu1 (!%p151_p2), %v1447_v4 }
   0xd   : > { %s1667_s16 = smov (!%p181_p3, %s1010_s16), 63 }
   0xe   : > { %s1099_s29 = sshll.u32 %s1667_s16, 3  ;;  %s1014_s26 = sshll.u32 %s1667_s16, 2 }
   0xf   : > { %1311 = vmatpush3.bf16.msra.mxu0 %v1448_v5  ;;  %1428 = vmatpush3.bf16.msra.mxu1 %v1448_v5  ;;  %s1529_s9 = scalar_lea.vmem %s1662_s0, %s1099_s29  ;;  %s1620_s29 = scalar_lea.vmem %s1664_s2, %s1014_s26 }
  0x10   : > { %1312 = vmatprep.subr.bf16.mxu0 %v1449_v6  ;;  %1421 = vmatprep.subr.bf16.mxu1 %v1449_v6  ;;  %v200_v11 = vld [vmem:[%s1529_s9] sm:$0xff]  ;;  %v201_v12 = vld [vmem:[%s1529_s9 + $0x8] sm:$0xff]  ;;  %v202_v26 = vld [vmem:[%s1529_s9 + $0x10] sm:$0xff]  ;;  %s1629_s4 = scalar_lea.vmem %s1665_s3, %s1014_s26 }
  0x11   : > { %v216_v13 = vld [vmem:[%s1529_s9 + $0x80] sm:$0xff]  ;;  %v232_v15 = vmax.bf16 %v1467_v14, %v200_v11  ;;  %v233_v16 = vmax.bf16 %v1467_v14, %v201_v12  ;;  %v217_v17 = vld [vmem:[%s1529_s9 + $0x88] sm:$0xff]  ;;  %v203_v27 = vld [vmem:[%s1529_s9 + $0x18] sm:$0xff]  ;;  %v234_v30 = vmax.bf16 %v1467_v14, %v202_v26 }
  0x12   : > { %v248_v18 = vmax.bf16 %v1467_v14, %v216_v13  ;;  %v249_v19 = vmax.bf16 %v1467_v14, %v217_v17  ;;  %v218_v28 = vld [vmem:[%s1529_s9 + $0x90] sm:$0xff]  ;;  %v219_v29 = vld [vmem:[%s1529_s9 + $0x98] sm:$0xff]  ;;  %v235_v32 = vmax.bf16 %v1467_v14, %v203_v27  ;;  %v204_v39 = vld [vmem:[%s1529_s9 + $0x20] sm:$0xff] }
  0x13   : > { %1313 = vmatpush3.bf16.msra.mxu0 %v1450_v7  ;;  %1429 = vmatpush3.bf16.msra.mxu1 %v1450_v7  ;;  %v1018_v21 = vcombine.high %v232_v15, %v233_v16  ;;  %v250_v33 = vmax.bf16 %v1467_v14, %v218_v28  ;;  %v251_v34 = vmax.bf16 %v1467_v14, %v219_v29  ;;  %v205_v40 = vld [vmem:[%s1529_s9 + $0x28] sm:$0xff]  ;;  %v220_v41 = vld [vmem:[%s1529_s9 + $0xa0] sm:$0xff]  ;;  %v206_v51 = vld [vmem:[%s1529_s9 + $0x30] sm:$0xff] }
  0x14   : > { %1314 = vmatprep.subr.bf16.mxu0 %v1451_v8  ;;  %1422 = vmatprep.subr.bf16.mxu1 %v1451_v8  ;;  %v1034_v23 = vcombine.high %v248_v18, %v249_v19  ;;  %v1017_v35 = vcombine.low %v232_v15, %v233_v16  ;;  %v1033_v36 = vcombine.low %v248_v18, %v249_v19  ;;  %v221_v42 = vld [vmem:[%s1529_s9 + $0xa8] sm:$0xff]  ;;  %v207_v52 = vld [vmem:[%s1529_s9 + $0x38] sm:$0xff]  ;;  %v222_v53 = vld [vmem:[%s1529_s9 + $0xb0] sm:$0xff] }
  0x15   : > { %648 = vmatprep.mubr.bf16.mxu0 %v1018_v21  ;;  %v1020_v37 = vcombine.high %v234_v30, %v235_v32  ;;  %v1036_v38 = vcombine.high %v250_v33, %v251_v34  ;;  %v236_v43 = vmax.bf16 %v1467_v14, %v204_v39  ;;  %v237_v44 = vmax.bf16 %v1467_v14, %v205_v40  ;;  %v223_v54 = vld [vmem:[%s1529_s9 + $0xb8] sm:$0xff]  ;;  %v208_v63 = vld [vmem:[%s1529_s9 + $0x40] sm:$0xff]  ;;  %v209_v0 = vld [vmem:[%s1529_s9 + $0x48] sm:$0xff] }
  0x16   : > { %712 = vmatprep.mubr.bf16.mxu1 %v1034_v23  ;;  %v252_v45 = vmax.bf16 %v1467_v14, %v220_v41  ;;  %v253_v46 = vmax.bf16 %v1467_v14, %v221_v42  ;;  %v1019_v47 = vcombine.low %v234_v30, %v235_v32  ;;  %v1035_v48 = vcombine.low %v250_v33, %v251_v34  ;;  %v224_v1 = vld [vmem:[%s1529_s9 + $0xc0] sm:$0xff]  ;;  %v225_v2 = vld [vmem:[%s1529_s9 + $0xc8] sm:$0xff]  ;;  %v210_v11 = vld [vmem:[%s1529_s9 + $0x50] sm:$0xff] }
  0x17   : > { %1315 = vmatpush3.bf16.msra.mxu0 %v1452_v9  ;;  %1430 = vmatpush3.bf16.msra.mxu1 %v1452_v9  ;;  %v1022_v49 = vcombine.high %v236_v43, %v237_v44  ;;  %v238_v55 = vmax.bf16 %v1467_v14, %v206_v51  ;;  %v239_v56 = vmax.bf16 %v1467_v14, %v207_v52  ;;  %v211_v12 = vld [vmem:[%s1529_s9 + $0x58] sm:$0xff]  ;;  %v226_v13 = vld [vmem:[%s1529_s9 + $0xd0] sm:$0xff]  ;;  %v228_v26 = vld [vmem:[%s1529_s9 + $0xe0] sm:$0xff] }
  0x18   : > { %1316 = vmatprep.subr.bf16.mxu0 %v1453_v10  ;;  %1423 = vmatprep.subr.bf16.mxu1 %v1453_v10  ;;  %v1038_v50 = vcombine.high %v252_v45, %v253_v46  ;;  %v254_v57 = vmax.bf16 %v1467_v14, %v222_v53  ;;  %v255_v58 = vmax.bf16 %v1467_v14, %v223_v54  ;;  %v227_v15 = vld [vmem:[%s1529_s9 + $0xd8] sm:$0xff]  ;;  %v229_v27 = vld [vmem:[%s1529_s9 + $0xe8] sm:$0xff] }
  0x19   : > { %v1021_v59 = vcombine.low %v236_v43, %v237_v44  ;;  %v1037_v60 = vcombine.low %v252_v45, %v253_v46  ;;  %v1024_v61 = vcombine.high %v238_v55, %v239_v56  ;;  %v240_v3 = vmax.bf16 %v1467_v14, %v208_v63  ;;  %v231_v39 = vld [vmem:[%s1529_s9 + $0xf8] sm:$0xff] }
  0x1a   : > { %v1040_v62 = vcombine.high %v254_v57, %v255_v58  ;;  %v241_v4 = vmax.bf16 %v1467_v14, %v209_v0  ;;  %v256_v5 = vmax.bf16 %v1467_v14, %v224_v1  ;;  %v257_v6 = vmax.bf16 %v1467_v14, %v225_v2 }
  0x1b   : > { %1317 = vmatpush3.bf16.msra.mxu0 %v1454_v20  ;;  %1431 = vmatpush3.bf16.msra.mxu1 %v1454_v20  ;;  %v1023_v7 = vcombine.low %v238_v55, %v239_v56  ;;  %v1039_v8 = vcombine.low %v254_v57, %v255_v58  ;;  %v242_v16 = vmax.bf16 %v1467_v14, %v210_v11 }
  0x1c   : > { %1318 = vmatprep.subr.bf16.mxu0 %v1455_v22  ;;  %1424 = vmatprep.subr.bf16.mxu1 %v1455_v22  ;;  %v1026_v9 = vcombine.high %v240_v3, %v241_v4  ;;  %v1042_v10 = vcombine.high %v256_v5, %v257_v6  ;;  %v243_v17 = vmax.bf16 %v1467_v14, %v211_v12 }
  0x1d   : > { %v258_v18 = vmax.bf16 %v1467_v14, %v226_v13  ;;  %v259_v19 = vmax.bf16 %v1467_v14, %v227_v15  ;;  %v1025_v20 = vcombine.low %v240_v3, %v241_v4  ;;  %v1041_v21 = vcombine.low %v256_v5, %v257_v6 }
  0x1e   : > { %v1028_v22 = vcombine.high %v242_v16, %v243_v17  ;;  %v260_v30 = vmax.bf16 %v1467_v14, %v228_v26  ;;  %v1027_v32 = vcombine.low %v242_v16, %v243_v17  ;;  %v263_v43 = vmax.bf16 %v1467_v14, %v231_v39 }
  0x1f   : > { %1319 = vmatpush3.bf16.msra.mxu0 %v1456_v24  ;;  %1432 = vmatpush3.bf16.msra.mxu1 %v1456_v24  ;;  %v1044_v23 = vcombine.high %v258_v18, %v259_v19  ;;  %v212_v24 = vld [vmem:[%s1529_s9 + $0x60] sm:$0xff]  ;;  %v1043_v33 = vcombine.low %v258_v18, %v259_v19 }
  0x20   : > { %1320 = vmatprep.subr.bf16.mxu0 %v1457_v25  ;;  %1425 = vmatprep.subr.bf16.mxu1 %v1457_v25  ;;  %v213_v25 = vld [vmem:[%s1529_s9 + $0x68] sm:$0xff]  ;;  %v244_v28 = vmax.bf16 %v1467_v14, %v212_v24 }
  0x21   : > { %v245_v29 = vmax.bf16 %v1467_v14, %v213_v25 }
  0x23   : > { %1321 = vmatpush3.bf16.msra.mxu0 %v1458_v31  ;;  %1433 = vmatpush3.bf16.msra.mxu1 %v1458_v31  ;;  %v261_v31 = vmax.bf16 %v1467_v14, %v229_v27  ;;  %v1030_v34 = vcombine.high %v244_v28, %v245_v29  ;;  %v1029_v44 = vcombine.low %v244_v28, %v245_v29 }
  0x25   : > { %v1045_v45 = vcombine.low %v260_v30, %v261_v31 }
  0x26   : > { %649 = vmatmul.mubr.bf16.vlgmr.msra.gmra.mrb[0].mxu0 %v1017_v35  ;;  %713 = vmatmul.mubr.bf16.vlgmr.msra.gmra.mrb[0].mxu1 %v1033_v36  ;;  %v1046_v35 = vcombine.high %v260_v30, %v261_v31  ;;  %v214_v36 = vld [vmem:[%s1529_s9 + $0x70] sm:$0xff] }
  0x27   : > { %656 = vmatprep.mubr.bf16.mxu0 %v1020_v37  ;;  %720 = vmatprep.mubr.bf16.mxu1 %v1036_v38  ;;  %v215_v37 = vld [vmem:[%s1529_s9 + $0x78] sm:$0xff]  ;;  %v230_v38 = vld [vmem:[%s1529_s9 + $0xf0] sm:$0xff]  ;;  %v246_v40 = vmax.bf16 %v1467_v14, %v214_v36 }
  0x28   : > { %v247_v41 = vmax.bf16 %v1467_v14, %v215_v37  ;;  %v262_v42 = vmax.bf16 %v1467_v14, %v230_v38  ;;  %v1133_v14 = vld [vmem:[%s1620_s29] sm:$0xff]  }
  0x29   : > { %v1134_v53 = vunpack.c.l.bf16 %v1133_v14 }
  0x2a   : > { %v1032_v46 = vcombine.high %v246_v40, %v247_v41 }
  0x2e   : > { %657 = vmatmul.mubr.bf16.gmra.mrb[4].mxu0 %v1019_v47  ;;  %721 = vmatmul.mubr.bf16.gmra.mrb[4].mxu1 %v1035_v48  ;;  %v1048_v47 = vcombine.high %v262_v42, %v263_v43  ;;  %v1031_v48 = vcombine.low %v246_v40, %v247_v41 }
  0x2f   : > { %664 = vmatprep.mubr.bf16.mxu0 %v1022_v49  ;;  %728 = vmatprep.mubr.bf16.mxu1 %v1038_v50  ;;  %v1047_v49 = vcombine.low %v262_v42, %v263_v43  ;;  %v1283_v50 = vld [vmem:[%s1620_s29 + $0x40] sm:$0xff]  }
  0x30   : > { %v1166_v55 = vunpack.c.l.bf16 %v1283_v50 }
  0x36   : > { %665 = vmatmul.mubr.bf16.gmra.mrb[8].mxu0 %v1021_v59  ;;  %729 = vmatmul.mubr.bf16.gmra.mrb[8].mxu1 %v1037_v60 }
  0x37   : > { %672 = vmatprep.mubr.bf16.mxu0 %v1024_v61  ;;  %736 = vmatprep.mubr.bf16.mxu1 %v1040_v62  ;;  %v1135_v61 = vunpack.c.h.bf16 %v1133_v14  ;;  %v1167_v62 = vunpack.c.h.bf16 %v1283_v50 }
  0x3e   : > { %673 = vmatmul.mubr.bf16.gmra.mrb[12].mxu0 %v1023_v7  ;;  %737 = vmatmul.mubr.bf16.gmra.mrb[12].mxu1 %v1039_v8  ;;  %v1276_v7 = vld [vmem:[%s1620_s29 + $0x8] sm:$0xff]  }
  0x3f   : > { %680 = vmatprep.mubr.bf16.mxu0 %v1026_v9  ;;  %744 = vmatprep.mubr.bf16.mxu1 %v1042_v10  ;;  %v1284_v8 = vld [vmem:[%s1620_s29 + $0x48] sm:$0xff]   ;;  %v1138_v13 = vunpack.c.l.bf16 %v1276_v7 }
  0x40   : > { %v1170_v16 = vunpack.c.l.bf16 %v1284_v8 }
  0x46   : > { %681 = vmatmul.mubr.bf16.gmra.mrb[16].mxu0 %v1025_v20  ;;  %745 = vmatmul.mubr.bf16.gmra.mrb[16].mxu1 %v1041_v21 }
  0x47   : > { %688 = vmatprep.mubr.bf16.mxu0 %v1028_v22  ;;  %752 = vmatprep.mubr.bf16.mxu1 %v1044_v23  ;;  %v1139_v22 = vunpack.c.h.bf16 %v1276_v7  ;;  %v1171_v23 = vunpack.c.h.bf16 %v1284_v8 }
  0x4e   : > { %689 = vmatmul.mubr.bf16.gmra.mrb[20].mxu0 %v1027_v32  ;;  %753 = vmatmul.mubr.bf16.gmra.mrb[20].mxu1 %v1043_v33  ;;  %v1277_v32 = vld [vmem:[%s1620_s29 + $0x10] sm:$0xff]  }
  0x4f   : > { %696 = vmatprep.mubr.bf16.mxu0 %v1030_v34  ;;  %760 = vmatprep.mubr.bf16.mxu1 %v1046_v35  ;;  %v1285_v33 = vld [vmem:[%s1620_s29 + $0x50] sm:$0xff]   ;;  %v1142_v38 = vunpack.c.l.bf16 %v1277_v32 }
  0x50   : > { %v1174_v40 = vunpack.c.l.bf16 %v1285_v33 }
  0x56   : > { %697 = vmatmul.mubr.bf16.gmra.mrb[24].mxu0 %v1029_v44  ;;  %761 = vmatmul.mubr.bf16.gmra.mrb[24].mxu1 %v1045_v45 }
  0x57   : > { %704 = vmatprep.mubr.bf16.mxu0 %v1032_v46  ;;  %768 = vmatprep.mubr.bf16.mxu1 %v1048_v47  ;;  %v1143_v46 = vunpack.c.h.bf16 %v1277_v32  ;;  %v1175_v47 = vunpack.c.h.bf16 %v1285_v33 }
  0x5e   : > { %705 = vmatmul.mubr.bf16.gmra.mrb[28].mxu0 %v1031_v48  ;;  %769 = vmatmul.mubr.bf16.gmra.mrb[28].mxu1 %v1047_v49 }
  0xf9   : > { %v1322_v51 = vpop.f32.mrb[0].mxu0  ;;  %v1370_v52 = vpop.f32.mrb[0].mxu1 }
  0xfa   : > { %v1323_v54 = vpop.f32.mrb[1].mxu0  ;;  %v1371_v56 = vpop.f32.mrb[1].mxu1 }
  0xfb   : > { %v1324_v57 = vadd.f32 %v1323_v54, %v1322_v51  ;;  %v1372_v58 = vadd.f32 %v1371_v56, %v1370_v52  ;;  %v1325_v59 = vpop.f32.mrb[2].mxu0  ;;  %v1373_v60 = vpop.f32.mrb[2].mxu1  ;;  %v1286_v56 = vld [vmem:[%s1620_s29 + $0x58] sm:$0xff]  }
  0xfc   : > { %v1326_v63 = vpop.f32.mrb[3].mxu0  ;;  %v1374_v0 = vpop.f32.mrb[3].mxu1 }
  0xfd   : > { %v1327_v1 = vadd.f32 %v1326_v63, %v1325_v59  ;;  %v1375_v2 = vadd.f32 %v1374_v0, %v1373_v60  ;;  %v651_v3 = vadd.f32 %v1324_v57, %v1134_v53  ;;  %v715_v4 = vadd.f32 %v1372_v58, %v1166_v55  ;;  %v1278_v55 = vld [vmem:[%s1620_s29 + $0x18] sm:$0xff]  }
  0xfe   : > { %v1178_v63 = vunpack.c.l.bf16 %v1286_v56 }
  0xff   : > { %v654_v5 = vadd.f32 %v1327_v1, %v1135_v61  ;;  %v718_v6 = vadd.f32 %v1375_v2, %v1167_v62  ;;  %v1146_v61 = vunpack.c.l.bf16 %v1278_v55 }
 0x101   : > { %v1199_v9 = vpack.c.bf16 %v654_v5, %v651_v3  ;;  %v1239_v10 = vpack.c.bf16 %v718_v6, %v715_v4  ;;  %v1328_v11 = vpop.f32.mrb[4].mxu0  ;;  %v1376_v12 = vpop.f32.mrb[4].mxu1  ;;  %v1147_v5 = vunpack.c.h.bf16 %v1278_v55  ;;  %v1179_v6 = vunpack.c.h.bf16 %v1286_v56 }
 0x102   : > { %v1329_v15 = vpop.f32.mrb[5].mxu0  ;;  %v1377_v17 = vpop.f32.mrb[5].mxu1 }
 0x103   : > { %1200 = vst [vmem:[%s1629_s4] sm:$0xff] %v1199_v9   ;;  %1298 = vst [vmem:[%s1629_s4 + $0x40] sm:$0xff] %v1239_v10   ;;  %v1330_v18 = vadd.f32 %v1329_v15, %v1328_v11  ;;  %v1378_v19 = vadd.f32 %v1377_v17, %v1376_v12  ;;  %v1331_v20 = vpop.f32.mrb[6].mxu0  ;;  %v1379_v21 = vpop.f32.mrb[6].mxu1  ;;  %v1287_v17 = vld [vmem:[%s1620_s29 + $0x60] sm:$0xff]  }
 0x104   : > { %v1332_v24 = vpop.f32.mrb[7].mxu0  ;;  %v1380_v25 = vpop.f32.mrb[7].mxu1 }
 0x105   : > { %v1333_v26 = vadd.f32 %v1332_v24, %v1331_v20  ;;  %v1381_v27 = vadd.f32 %v1380_v25, %v1379_v21  ;;  %v659_v28 = vadd.f32 %v1330_v18, %v1138_v13  ;;  %v723_v29 = vadd.f32 %v1378_v19, %v1170_v16  ;;  %v1279_v16 = vld [vmem:[%s1620_s29 + $0x20] sm:$0xff]  }
 0x106   : > { %v1182_v24 = vunpack.c.l.bf16 %v1287_v17 }
 0x107   : > { %v662_v30 = vadd.f32 %v1333_v26, %v1139_v22  ;;  %v726_v31 = vadd.f32 %v1381_v27, %v1171_v23  ;;  %v1150_v22 = vunpack.c.l.bf16 %v1279_v16 }
 0x109   : > { %v1204_v34 = vpack.c.bf16 %v662_v30, %v659_v28  ;;  %v1244_v35 = vpack.c.bf16 %v726_v31, %v723_v29  ;;  %v1334_v36 = vpop.f32.mrb[8].mxu0  ;;  %v1382_v37 = vpop.f32.mrb[8].mxu1  ;;  %v1151_v30 = vunpack.c.h.bf16 %v1279_v16  ;;  %v1183_v31 = vunpack.c.h.bf16 %v1287_v17 }
 0x10a   : > { %v1335_v39 = vpop.f32.mrb[9].mxu0  ;;  %v1383_v41 = vpop.f32.mrb[9].mxu1 }
 0x10b   : > { %1291 = vst [vmem:[%s1629_s4 + $0x8] sm:$0xff] %v1204_v34   ;;  %1299 = vst [vmem:[%s1629_s4 + $0x48] sm:$0xff] %v1244_v35   ;;  %v1336_v42 = vadd.f32 %v1335_v39, %v1334_v36  ;;  %v1384_v43 = vadd.f32 %v1383_v41, %v1382_v37  ;;  %v1337_v44 = vpop.f32.mrb[10].mxu0  ;;  %v1385_v45 = vpop.f32.mrb[10].mxu1  ;;  %v1288_v41 = vld [vmem:[%s1620_s29 + $0x68] sm:$0xff]  }
 0x10c   : > { %v1338_v48 = vpop.f32.mrb[11].mxu0  ;;  %v1386_v49 = vpop.f32.mrb[11].mxu1 }
 0x10d   : > { %v1339_v14 = vadd.f32 %v1338_v48, %v1337_v44  ;;  %v1387_v50 = vadd.f32 %v1386_v49, %v1385_v45  ;;  %v667_v51 = vadd.f32 %v1336_v42, %v1142_v38  ;;  %v731_v52 = vadd.f32 %v1384_v43, %v1174_v40  ;;  %v1280_v40 = vld [vmem:[%s1620_s29 + $0x28] sm:$0xff]  }
 0x10e   : > { %v1186_v48 = vunpack.c.l.bf16 %v1288_v41 }
 0x10f   : > { %v670_v53 = vadd.f32 %v1339_v14, %v1143_v46  ;;  %v734_v54 = vadd.f32 %v1387_v50, %v1175_v47  ;;  %v1154_v46 = vunpack.c.l.bf16 %v1280_v40 }
 0x111   : > { %v1209_v57 = vpack.c.bf16 %v670_v53, %v667_v51  ;;  %v1249_v58 = vpack.c.bf16 %v734_v54, %v731_v52  ;;  %v1340_v59 = vpop.f32.mrb[12].mxu0  ;;  %v1388_v60 = vpop.f32.mrb[12].mxu1  ;;  %v1155_v53 = vunpack.c.h.bf16 %v1280_v40  ;;  %v1187_v54 = vunpack.c.h.bf16 %v1288_v41 }
 0x112   : > { %v1341_v62 = vpop.f32.mrb[13].mxu0  ;;  %v1389_v0 = vpop.f32.mrb[13].mxu1 }
 0x113   : > { %1292 = vst [vmem:[%s1629_s4 + $0x10] sm:$0xff] %v1209_v57   ;;  %1300 = vst [vmem:[%s1629_s4 + $0x50] sm:$0xff] %v1249_v58   ;;  %v1342_v1 = vadd.f32 %v1341_v62, %v1340_v59  ;;  %v1390_v2 = vadd.f32 %v1389_v0, %v1388_v60  ;;  %v1343_v3 = vpop.f32.mrb[14].mxu0  ;;  %v1391_v4 = vpop.f32.mrb[14].mxu1  ;;  %v1289_v0 = vld [vmem:[%s1620_s29 + $0x70] sm:$0xff]  }
 0x114   : > { %v1344_v7 = vpop.f32.mrb[15].mxu0  ;;  %v1392_v8 = vpop.f32.mrb[15].mxu1 }
 0x115   : > { %v1345_v9 = vadd.f32 %v1344_v7, %v1343_v3  ;;  %v1393_v10 = vadd.f32 %v1392_v8, %v1391_v4  ;;  %v675_v11 = vadd.f32 %v1342_v1, %v1146_v61  ;;  %v739_v12 = vadd.f32 %v1390_v2, %v1178_v63  ;;  %v1281_v63 = vld [vmem:[%s1620_s29 + $0x30] sm:$0xff]  }
 0x116   : > { %v1190_v7 = vunpack.c.l.bf16 %v1289_v0 }
 0x117   : > { %v678_v13 = vadd.f32 %v1345_v9, %v1147_v5  ;;  %v742_v15 = vadd.f32 %v1393_v10, %v1179_v6  ;;  %v1158_v5 = vunpack.c.l.bf16 %v1281_v63 }
 0x119   : > { %v1214_v18 = vpack.c.bf16 %v678_v13, %v675_v11  ;;  %v1254_v19 = vpack.c.bf16 %v742_v15, %v739_v12  ;;  %v1346_v20 = vpop.f32.mrb[16].mxu0  ;;  %v1394_v21 = vpop.f32.mrb[16].mxu1  ;;  %v1159_v13 = vunpack.c.h.bf16 %v1281_v63  ;;  %v1191_v15 = vunpack.c.h.bf16 %v1289_v0 }
 0x11a   : > { %v1347_v23 = vpop.f32.mrb[17].mxu0  ;;  %v1395_v25 = vpop.f32.mrb[17].mxu1 }
 0x11b   : > { %1293 = vst [vmem:[%s1629_s4 + $0x18] sm:$0xff] %v1214_v18   ;;  %1301 = vst [vmem:[%s1629_s4 + $0x58] sm:$0xff] %v1254_v19   ;;  %v1348_v26 = vadd.f32 %v1347_v23, %v1346_v20  ;;  %v1396_v27 = vadd.f32 %v1395_v25, %v1394_v21  ;;  %v1349_v28 = vpop.f32.mrb[18].mxu0  ;;  %v1397_v29 = vpop.f32.mrb[18].mxu1  ;;  %v1290_v25 = vld [vmem:[%s1620_s29 + $0x78] sm:$0xff]  }
 0x11c   : > { %v1350_v32 = vpop.f32.mrb[19].mxu0  ;;  %v1398_v33 = vpop.f32.mrb[19].mxu1 }
 0x11d   : > { %v1351_v34 = vadd.f32 %v1350_v32, %v1349_v28  ;;  %v1399_v35 = vadd.f32 %v1398_v33, %v1397_v29  ;;  %v683_v36 = vadd.f32 %v1348_v26, %v1150_v22  ;;  %v747_v37 = vadd.f32 %v1396_v27, %v1182_v24  ;;  %v1282_v24 = vld [vmem:[%s1620_s29 + $0x38] sm:$0xff]  }
 0x11e   : > { %v1194_v32 = vunpack.c.l.bf16 %v1290_v25 }
 0x11f   : > { %v686_v38 = vadd.f32 %v1351_v34, %v1151_v30  ;;  %v750_v39 = vadd.f32 %v1399_v35, %v1183_v31  ;;  %v1162_v30 = vunpack.c.l.bf16 %v1282_v24 }
 0x121   : > { %v1219_v42 = vpack.c.bf16 %v686_v38, %v683_v36  ;;  %v1259_v43 = vpack.c.bf16 %v750_v39, %v747_v37  ;;  %v1352_v44 = vpop.f32.mrb[20].mxu0  ;;  %v1400_v45 = vpop.f32.mrb[20].mxu1  ;;  %v1163_v38 = vunpack.c.h.bf16 %v1282_v24  ;;  %v1195_v39 = vunpack.c.h.bf16 %v1290_v25 }
 0x122   : > { %v1353_v47 = vpop.f32.mrb[21].mxu0  ;;  %v1401_v49 = vpop.f32.mrb[21].mxu1 }
 0x123   : > { %1294 = vst [vmem:[%s1629_s4 + $0x20] sm:$0xff] %v1219_v42   ;;  %1302 = vst [vmem:[%s1629_s4 + $0x60] sm:$0xff] %v1259_v43   ;;  %v1354_v14 = vadd.f32 %v1353_v47, %v1352_v44  ;;  %v1402_v50 = vadd.f32 %v1401_v49, %v1400_v45  ;;  %v1355_v51 = vpop.f32.mrb[22].mxu0  ;;  %v1403_v52 = vpop.f32.mrb[22].mxu1 }
 0x124   : > { %v1356_v55 = vpop.f32.mrb[23].mxu0  ;;  %v1404_v56 = vpop.f32.mrb[23].mxu1 }
 0x125   : > { %v1357_v57 = vadd.f32 %v1356_v55, %v1355_v51  ;;  %v1405_v58 = vadd.f32 %v1404_v56, %v1403_v52  ;;  %v691_v59 = vadd.f32 %v1354_v14, %v1154_v46  ;;  %v755_v60 = vadd.f32 %v1402_v50, %v1186_v48 }
 0x127   : > { %v694_v61 = vadd.f32 %v1357_v57, %v1155_v53  ;;  %v758_v62 = vadd.f32 %v1405_v58, %v1187_v54 }
 0x129   : > { %v1224_v1 = vpack.c.bf16 %v694_v61, %v691_v59  ;;  %v1264_v2 = vpack.c.bf16 %v758_v62, %v755_v60  ;;  %v1358_v3 = vpop.f32.mrb[24].mxu0  ;;  %v1406_v4 = vpop.f32.mrb[24].mxu1 }
 0x12a   : > { %v1359_v6 = vpop.f32.mrb[25].mxu0  ;;  %v1407_v8 = vpop.f32.mrb[25].mxu1 }
 0x12b   : > { %1295 = vst [vmem:[%s1629_s4 + $0x28] sm:$0xff] %v1224_v1   ;;  %1303 = vst [vmem:[%s1629_s4 + $0x68] sm:$0xff] %v1264_v2   ;;  %v1360_v9 = vadd.f32 %v1359_v6, %v1358_v3  ;;  %v1408_v10 = vadd.f32 %v1407_v8, %v1406_v4  ;;  %v1361_v11 = vpop.f32.mrb[26].mxu0  ;;  %v1409_v12 = vpop.f32.mrb[26].mxu1 }
 0x12c   : > { %v1362_v16 = vpop.f32.mrb[27].mxu0  ;;  %v1410_v17 = vpop.f32.mrb[27].mxu1 }
 0x12d   : > { %v1363_v18 = vadd.f32 %v1362_v16, %v1361_v11  ;;  %v1411_v19 = vadd.f32 %v1410_v17, %v1409_v12  ;;  %v699_v20 = vadd.f32 %v1360_v9, %v1158_v5  ;;  %v763_v21 = vadd.f32 %v1408_v10, %v1190_v7 }
 0x12f   : > { %v702_v22 = vadd.f32 %v1363_v18, %v1159_v13  ;;  %v766_v23 = vadd.f32 %v1411_v19, %v1191_v15 }
 0x131   : > { %v1229_v26 = vpack.c.bf16 %v702_v22, %v699_v20  ;;  %v1269_v27 = vpack.c.bf16 %v766_v23, %v763_v21  ;;  %v1364_v28 = vpop.f32.mrb[28].mxu0  ;;  %v1412_v29 = vpop.f32.mrb[28].mxu1 }
 0x132   : > { %v1365_v31 = vpop.f32.mrb[29].mxu0  ;;  %v1413_v33 = vpop.f32.mrb[29].mxu1 }
 0x133   : > { %1296 = vst [vmem:[%s1629_s4 + $0x30] sm:$0xff] %v1229_v26   ;;  %1304 = vst [vmem:[%s1629_s4 + $0x70] sm:$0xff] %v1269_v27   ;;  %v1366_v34 = vadd.f32 %v1365_v31, %v1364_v28  ;;  %v1414_v35 = vadd.f32 %v1413_v33, %v1412_v29  ;;  %v1367_v36 = vpop.f32.mrb[30].mxu0  ;;  %v1415_v37 = vpop.f32.mrb[30].mxu1 }
 0x134   : > { %v1368_v40 = vpop.f32.mrb[31].mxu0  ;;  %v1416_v41 = vpop.f32.mrb[31].mxu1 }
 0x135   : > { %v1369_v42 = vadd.f32 %v1368_v40, %v1367_v36  ;;  %v1417_v43 = vadd.f32 %v1416_v41, %v1415_v37  ;;  %v707_v44 = vadd.f32 %v1366_v34, %v1162_v30  ;;  %v771_v45 = vadd.f32 %v1414_v35, %v1194_v32 }
 0x137   : > { %v710_v46 = vadd.f32 %v1369_v42, %v1163_v38  ;;  %v774_v47 = vadd.f32 %v1417_v43, %v1195_v39 }
 0x139   : > { %v1234_v48 = vpack.c.bf16 %v710_v46, %v707_v44  ;;  %v1274_v49 = vpack.c.bf16 %v774_v47, %v771_v45 }
 0x13b   : > { %1297 = vst [vmem:[%s1629_s4 + $0x38] sm:$0xff] %v1234_v48   ;;  %1305 = vst [vmem:[%s1629_s4 + $0x78] sm:$0xff] %v1274_v49  }
 0x13c PF: > { %s13_s12 = sadd.s32 1, %s1465_s12  }
 0x13d   : > { %p10_p4 = scmp.ge.s32.totalorder %s13_s12, 4  }
 0x13f   :  { %12 = sbr.rel (!%p10_p4) target bundleno = 1 (0x1), region = 65 }

// kernel: wrn_mcdonnell_forward.11
= control target key start
LH: loop header
LB: loop body
LE: loop exit
PB: predicated region body
PF: predicated region fallthrough
CT: control target
= control target key end

     0   :  { %s677_s9 = smov 0   ;;  %s756_s0 = inlined_call_operand.vmem [shape: bf16[128,256], index: 0, kind: input, shape index: {}]   ;;  %s757_s1 = inlined_call_operand.vmem [shape: bf16[256,128], index: 1, kind: input, shape index: {}]   ;;  %s758_s2 = inlined_call_operand.vmem [shape: bf16[128,128], index: 2, kind: output, shape index: {}]  }
   0x1 LB: > { %s496_s10 = sadd.s32 4294967295, %s659_s9   ;;  %p500_p0 = scmp.ge.s32.totalorder %s659_s9, 1  ;;  %s659_s9 = sphi %s677_s9, %s12_s9  }
   0x2   : > { %p114_p1 = scmp.lt.s32.totalorder %s659_s9, 3 }
   0x4   : > { %p115_p2 = pnand %p500_p0, %p114_p1 }
   0x5   : > { %v637_v0 = vld [vmem:[%s757_s1 + $0x40] sm:$0xff] (!%p115_p2)   ;;  %s501_s13 = sshll.u32 (!%p115_p2), %s496_s10, 3  ;;  %v639_v2 = vld [vmem:[%s757_s1 + $0x48] sm:$0xff] (!%p115_p2)   ;;  %v641_v4 = vld [vmem:[%s757_s1 + $0x50] sm:$0xff] (!%p115_p2)   ;;  %v661_v14 = vmov (!%p115_p2), 0  }
   0x6   : > { %118 = sbr.rel (%p115_p2) target bundleno = 266 (0x10a), region = 28  ;;  %v638_v1 = vld [vmem:[%s757_s1] sm:$0xff] (!%p115_p2)   ;;  %572 = vmatprep.subr.bf16.mxu0 (!%p115_p2), %v637_v0  ;;  %612 = vmatprep.subr.bf16.mxu1 (!%p115_p2), %v637_v0  ;;  %p138_p3 = scmp.lt.s32.totalorder (!%p115_p2), %s501_s13, 15  ;;  %v640_v3 = vld [vmem:[%s757_s1 + $0x8] sm:$0xff] (!%p115_p2)   ;;  %v642_v5 = vld [vmem:[%s757_s1 + $0x10] sm:$0xff] (!%p115_p2)  }
   0x7   : > { %573 = vmatpush3.bf16.msra.mxu0 (!%p115_p2), %v638_v1  ;;  %620 = vmatpush3.bf16.msra.mxu1 (!%p115_p2), %v638_v1  ;;  %v643_v6 = vld [vmem:[%s757_s1 + $0x58] sm:$0xff] (!%p115_p2)   ;;  %v645_v8 = vld [vmem:[%s757_s1 + $0x60] sm:$0xff] (!%p115_p2)   ;;  %v647_v10 = vld [vmem:[%s757_s1 + $0x68] sm:$0xff] (!%p115_p2)  }
   0x8   : > { %574 = vmatprep.subr.bf16.mxu0 (!%p115_p2), %v639_v2  ;;  %613 = vmatprep.subr.bf16.mxu1 (!%p115_p2), %v639_v2  ;;  %v644_v7 = vld [vmem:[%s757_s1 + $0x18] sm:$0xff] (!%p115_p2)   ;;  %v646_v9 = vld [vmem:[%s757_s1 + $0x20] sm:$0xff] (!%p115_p2)   ;;  %v648_v20 = vld [vmem:[%s757_s1 + $0x28] sm:$0xff] (!%p115_p2)  }
   0x9   : > { %v649_v22 = vld [vmem:[%s757_s1 + $0x70] sm:$0xff] (!%p115_p2)   ;;  %v651_v25 = vld [vmem:[%s757_s1 + $0x78] sm:$0xff] (!%p115_p2)  }
   0xa   : > { %v650_v24 = vld [vmem:[%s757_s1 + $0x30] sm:$0xff] (!%p115_p2)   ;;  %v652_v31 = vld [vmem:[%s757_s1 + $0x38] sm:$0xff] (!%p115_p2)  }
   0xb   : > { %575 = vmatpush3.bf16.msra.mxu0 (!%p115_p2), %v640_v3  ;;  %621 = vmatpush3.bf16.msra.mxu1 (!%p115_p2), %v640_v3 }
   0xc   : > { %576 = vmatprep.subr.bf16.mxu0 (!%p115_p2), %v641_v4  ;;  %614 = vmatprep.subr.bf16.mxu1 (!%p115_p2), %v641_v4 }
   0xd   : > { %s760_s13 = smov (!%p138_p3, %s501_s13), 15 }
   0xe   : > { %s540_s26 = sshll.u32 %s760_s13, 3  ;;  %s505_s22 = sshll.u32 %s760_s13, 2 }
   0xf   : > { %577 = vmatpush3.bf16.msra.mxu0 %v642_v5  ;;  %622 = vmatpush3.bf16.msra.mxu1 %v642_v5  ;;  %s718_s5 = scalar_lea.vmem %s756_s0, %s540_s26  ;;  %s148_s25 = scalar_lea.vmem %s758_s2, %s505_s22 }
  0x10   : > { %578 = vmatprep.subr.bf16.mxu0 %v643_v6  ;;  %615 = vmatprep.subr.bf16.mxu1 %v643_v6  ;;  %v151_v11 = vld [vmem:[%s718_s5] sm:$0xff]  ;;  %v152_v12 = vld [vmem:[%s718_s5 + $0x8] sm:$0xff]  ;;  %v153_v26 = vld [vmem:[%s718_s5 + $0x10] sm:$0xff] }
  0x11   : > { %v155_v13 = vld [vmem:[%s718_s5 + $0x20] sm:$0xff]  ;;  %v159_v15 = vmax.bf16 %v661_v14, %v151_v11  ;;  %v160_v16 = vmax.bf16 %v661_v14, %v152_v12  ;;  %v156_v17 = vld [vmem:[%s718_s5 + $0x28] sm:$0xff]  ;;  %v154_v27 = vld [vmem:[%s718_s5 + $0x18] sm:$0xff]  ;;  %v161_v30 = vmax.bf16 %v661_v14, %v153_v26 }
  0x12   : > { %v163_v18 = vmax.bf16 %v661_v14, %v155_v13  ;;  %v164_v19 = vmax.bf16 %v661_v14, %v156_v17  ;;  %v157_v28 = vld [vmem:[%s718_s5 + $0x30] sm:$0xff]  ;;  %v158_v29 = vld [vmem:[%s718_s5 + $0x38] sm:$0xff]  ;;  %v162_v32 = vmax.bf16 %v661_v14, %v154_v27 }
  0x13   : > { %579 = vmatpush3.bf16.msra.mxu0 %v644_v7  ;;  %623 = vmatpush3.bf16.msra.mxu1 %v644_v7  ;;  %v507_v21 = vcombine.high %v159_v15, %v160_v16  ;;  %v165_v33 = vmax.bf16 %v661_v14, %v157_v28  ;;  %v166_v34 = vmax.bf16 %v661_v14, %v158_v29 }
  0x14   : > { %580 = vmatprep.subr.bf16.mxu0 %v645_v8  ;;  %616 = vmatprep.subr.bf16.mxu1 %v645_v8  ;;  %v511_v23 = vcombine.high %v163_v18, %v164_v19  ;;  %v506_v35 = vcombine.low %v159_v15, %v160_v16  ;;  %v510_v36 = vcombine.low %v163_v18, %v164_v19 }
  0x15   : > { %367 = vmatprep.mubr.bf16.mxu0 %v507_v21  ;;  %v509_v37 = vcombine.high %v161_v30, %v162_v32  ;;  %v513_v38 = vcombine.high %v165_v33, %v166_v34  ;;  %v508_v39 = vcombine.low %v161_v30, %v162_v32  ;;  %v512_v40 = vcombine.low %v165_v33, %v166_v34 }
  0x16   : > { %383 = vmatprep.mubr.bf16.mxu1 %v511_v23 }
  0x17   : > { %581 = vmatpush3.bf16.msra.mxu0 %v646_v9  ;;  %624 = vmatpush3.bf16.msra.mxu1 %v646_v9 }
  0x18   : > { %582 = vmatprep.subr.bf16.mxu0 %v647_v10  ;;  %617 = vmatprep.subr.bf16.mxu1 %v647_v10 }
  0x1b   : > { %583 = vmatpush3.bf16.msra.mxu0 %v648_v20  ;;  %625 = vmatpush3.bf16.msra.mxu1 %v648_v20 }
  0x1c   : > { %584 = vmatprep.subr.bf16.mxu0 %v649_v22  ;;  %618 = vmatprep.subr.bf16.mxu1 %v649_v22 }
  0x1f   : > { %585 = vmatpush3.bf16.msra.mxu0 %v650_v24  ;;  %626 = vmatpush3.bf16.msra.mxu1 %v650_v24 }
  0x20   : > { %586 = vmatprep.subr.bf16.mxu0 %v651_v25  ;;  %619 = vmatprep.subr.bf16.mxu1 %v651_v25 }
  0x23   : > { %587 = vmatpush3.bf16.msra.mxu0 %v652_v31  ;;  %627 = vmatpush3.bf16.msra.mxu1 %v652_v31 }
  0x26   : > { %368 = vmatmul.mubr.bf16.vlgmr.msra.gmra.mrb[0].mxu0 %v506_v35  ;;  %384 = vmatmul.mubr.bf16.vlgmr.msra.gmra.mrb[0].mxu1 %v510_v36 }
  0x27   : > { %375 = vmatprep.mubr.bf16.mxu0 %v509_v37  ;;  %391 = vmatprep.mubr.bf16.mxu1 %v513_v38 }
  0x2e   : > { %376 = vmatmul.mubr.bf16.gmra.mrb[4].mxu0 %v508_v39  ;;  %392 = vmatmul.mubr.bf16.gmra.mrb[4].mxu1 %v512_v40 }
  0xf9   : > { %v588_v41 = vpop.f32.mrb[0].mxu0  ;;  %v600_v42 = vpop.f32.mrb[0].mxu1 }
  0xfa   : > { %v589_v43 = vpop.f32.mrb[1].mxu0  ;;  %v601_v44 = vpop.f32.mrb[1].mxu1 }
  0xfb   : > { %v590_v45 = vadd.f32 %v589_v43, %v588_v41  ;;  %v602_v46 = vadd.f32 %v601_v44, %v600_v42  ;;  %v591_v47 = vpop.f32.mrb[2].mxu0  ;;  %v603_v48 = vpop.f32.mrb[2].mxu1 }
  0xfc   : > { %v592_v49 = vpop.f32.mrb[3].mxu0  ;;  %v604_v50 = vpop.f32.mrb[3].mxu1 }
  0xfd   : > { %v593_v51 = vadd.f32 %v592_v49, %v591_v47  ;;  %v605_v52 = vadd.f32 %v604_v50, %v603_v48 }
  0xff   : > { %v552_v53 = vpack.c.bf16 %v593_v51, %v590_v45  ;;  %v562_v54 = vpack.c.bf16 %v605_v52, %v602_v46 }
 0x101   : > { %553 = vst [vmem:[%s148_s25] sm:$0xff] %v552_v53   ;;  %570 = vst [vmem:[%s148_s25 + $0x10] sm:$0xff] %v562_v54   ;;  %v594_v55 = vpop.f32.mrb[4].mxu0  ;;  %v606_v56 = vpop.f32.mrb[4].mxu1 }
 0x102   : > { %v595_v57 = vpop.f32.mrb[5].mxu0  ;;  %v607_v58 = vpop.f32.mrb[5].mxu1 }
 0x103   : > { %v596_v59 = vadd.f32 %v595_v57, %v594_v55  ;;  %v608_v60 = vadd.f32 %v607_v58, %v606_v56  ;;  %v597_v61 = vpop.f32.mrb[6].mxu0  ;;  %v609_v62 = vpop.f32.mrb[6].mxu1 }
 0x104   : > { %v598_v63 = vpop.f32.mrb[7].mxu0  ;;  %v610_v0 = vpop.f32.mrb[7].mxu1 }
 0x105   : > { %v599_v1 = vadd.f32 %v598_v63, %v597_v61  ;;  %v611_v2 = vadd.f32 %v610_v0, %v609_v62 }
 0x107   : > { %v557_v3 = vpack.c.bf16 %v599_v1, %v596_v59  ;;  %v567_v4 = vpack.c.bf16 %v611_v2, %v608_v60 }
 0x109   : > { %569 = vst [vmem:[%s148_s25 + $0x8] sm:$0xff] %v557_v3   ;;  %571 = vst [vmem:[%s148_s25 + $0x18] sm:$0xff] %v567_v4  }
 0x10a PF: > { %s12_s9 = sadd.s32 1, %s659_s9  }
 0x10b   : > { %p9_p4 = scmp.ge.s32.totalorder %s12_s9, 4  }
 0x10d   :  { %11 = sbr.rel (!%p9_p4) target bundleno = 1 (0x1), region = 58 }

// kernel: wrn_mcdonnell_forward.12
= control target key start
LH: loop header
LB: loop body
LE: loop exit
PB: predicated region body
PF: predicated region fallthrough
CT: control target
= control target key end

     0   :  { %s988_s12 = smov 0   ;;  %s1114_s0 = inlined_call_operand.vmem [shape: bf16[128,384], index: 0, kind: input, shape index: {}]   ;;  %s1115_s1 = inlined_call_operand.vmem [shape: bf16[384,128], index: 1, kind: input, shape index: {}]   ;;  %s1116_s2 = inlined_call_operand.vmem [shape: bf16[128,128], index: 2, kind: input, shape index: {}]   ;;  %s1117_s3 = inlined_call_operand.vmem [shape: bf16[128,128], index: 3, kind: output, shape index: {}]  }
   0x1 LB: > { %s742_s13 = sadd.s32 4294967295, %s965_s12   ;;  %p746_p0 = scmp.ge.s32.totalorder %s965_s12, 1  ;;  %s965_s12 = sphi %s988_s12, %s13_s12  }
   0x2   : > { %p150_p1 = scmp.lt.s32.totalorder %s965_s12, 3 }
   0x4   : > { %p151_p2 = pnand %p746_p0, %p150_p1 }
   0x5   : > { %v935_v0 = vld [vmem:[%s1115_s1 + $0x40] sm:$0xff] (!%p151_p2)   ;;  %v937_v2 = vld [vmem:[%s1115_s1 + $0x48] sm:$0xff] (!%p151_p2)   ;;  %v940_v5 = vld [vmem:[%s1115_s1 + $0x50] sm:$0xff] (!%p151_p2)   ;;  %s747_s26 = sshll.u32 (!%p151_p2), %s742_s13, 3  ;;  %v967_v24 = vmov (!%p151_p2), 0  }
   0x6   : > { %154 = sbr.rel (%p151_p2) target bundleno = 286 (0x11e), region = 32  ;;  %v936_v1 = vld [vmem:[%s1115_s1] sm:$0xff] (!%p151_p2)   ;;  %849 = vmatprep.subr.bf16.mxu0 (!%p151_p2), %v935_v0  ;;  %v939_v4 = vld [vmem:[%s1115_s1 + $0x8] sm:$0xff] (!%p151_p2)   ;;  %v942_v7 = vld [vmem:[%s1115_s1 + $0x10] sm:$0xff] (!%p151_p2)   ;;  %p181_p3 = scmp.lt.s32.totalorder (!%p151_p2), %s747_s26, 15 }
   0x7   : > { %850 = vmatpush3.bf16.msra.mxu0 (!%p151_p2), %v936_v1  ;;  %v938_v3 = vld [vmem:[%s1115_s1 + $0x80] sm:$0xff] (!%p151_p2)   ;;  %v941_v6 = vld [vmem:[%s1115_s1 + $0x88] sm:$0xff] (!%p151_p2)   ;;  %v943_v8 = vld [vmem:[%s1115_s1 + $0x58] sm:$0xff] (!%p151_p2)  }
   0x8   : > { %851 = vmatprep.subr.bf16.mxu0 (!%p151_p2), %v937_v2  ;;  %901 = vmatprep.subr.bf16.mxu1 (!%p151_p2), %v938_v3  ;;  %v944_v9 = vld [vmem:[%s1115_s1 + $0x90] sm:$0xff] (!%p151_p2)   ;;  %v945_v10 = vld [vmem:[%s1115_s1 + $0x18] sm:$0xff] (!%p151_p2)   ;;  %v946_v11 = vld [vmem:[%s1115_s1 + $0x60] sm:$0xff] (!%p151_p2)  }
   0x9   : > { %902 = vmatpush3.bf16.msra.mxu1 (!%p151_p2), %v938_v3  ;;  %v947_v12 = vld [vmem:[%s1115_s1 + $0x98] sm:$0xff] (!%p151_p2)   ;;  %v948_v13 = vld [vmem:[%s1115_s1 + $0x20] sm:$0xff] (!%p151_p2)   ;;  %v949_v15 = vld [vmem:[%s1115_s1 + $0x68] sm:$0xff] (!%p151_p2)  }
   0xa   : > { %903 = vmatprep.subr.bf16.mxu1 (!%p151_p2), %v941_v6  ;;  %v950_v14 = vld [vmem:[%s1115_s1 + $0xa0] sm:$0xff] (!%p151_p2)   ;;  %v951_v16 = vld [vmem:[%s1115_s1 + $0x28] sm:$0xff] (!%p151_p2)   ;;  %v952_v18 = vld [vmem:[%s1115_s1 + $0x70] sm:$0xff] (!%p151_p2)  }
   0xb   : > { %852 = vmatpush3.bf16.msra.mxu0 (!%p151_p2), %v939_v4  ;;  %v953_v17 = vld [vmem:[%s1115_s1 + $0xa8] sm:$0xff] (!%p151_p2)   ;;  %v954_v19 = vld [vmem:[%s1115_s1 + $0x30] sm:$0xff] (!%p151_p2)   ;;  %v955_v23 = vld [vmem:[%s1115_s1 + $0x78] sm:$0xff] (!%p151_p2)  }
   0xc   : > { %853 = vmatprep.subr.bf16.mxu0 (!%p151_p2), %v940_v5  ;;  %v956_v20 = vld [vmem:[%s1115_s1 + $0xb0] sm:$0xff] (!%p151_p2)   ;;  %v957_v28 = vld [vmem:[%s1115_s1 + $0x38] sm:$0xff] (!%p151_p2)  }
   0xd   : > { %904 = vmatpush3.bf16.msra.mxu1 %v941_v6  ;;  %s1119_s26 = smov (!%p181_p3, %s747_s26), 15  ;;  %v958_v37 = vld [vmem:[%s1115_s1 + $0xb8] sm:$0xff]  }
   0xe   : > { %905 = vmatprep.subr.bf16.mxu1 %v944_v9  ;;  %s925_s21 = smul.u32 12, %s1119_s26  ;;  %s750_s16 = sshll.u32 %s1119_s26, 2 }
   0xf   : > { %854 = vmatpush3.bf16.msra.mxu0 %v942_v7  ;;  %s1096_s19 = scalar_lea.vmem %s1116_s2, %s750_s16 }
  0x10   : > { %855 = vmatprep.subr.bf16.mxu0 %v943_v8  ;;  %s1059_s4 = scalar_lea.vmem %s1114_s0, %s925_s21  ;;  %v808_v5 = vld [vmem:[%s1096_s19] sm:$0xff]   ;;  %s1103_s21 = scalar_lea.vmem %s1117_s3, %s750_s16 }
  0x11   : > { %906 = vmatpush3.bf16.msra.mxu1 %v944_v9  ;;  %v200_v21 = vld [vmem:[%s1059_s4] sm:$0xff]  ;;  %v202_v22 = vld [vmem:[%s1059_s4 + $0xc] sm:$0xff]  ;;  %v201_v27 = vld [vmem:[%s1059_s4 + $0x8] sm:$0xf]  ;;  %v809_v7 = vunpack.c.l.bf16 %v808_v5 }
  0x12   : > { %907 = vmatprep.subr.bf16.mxu1 %v947_v12  ;;  %v216_v25 = vmax.bf16 %v967_v24, %v200_v21  ;;  %v218_v26 = vmax.bf16 %v967_v24, %v202_v22  ;;  %v203_v29 = vld [vmem:[%s1059_s4 + $0x14] sm:$0xf]  ;;  %v217_v30 = vmax.bf16 %v967_v24, %v201_v27  ;;  %v205_v31 = vld [vmem:[%s1059_s4 + $0x20] sm:$0xf]  ;;  %v207_v34 = vld [vmem:[%s1059_s4 + $0x2c] sm:$0xf] }
  0x13   : > { %856 = vmatpush3.bf16.msra.mxu0 %v945_v10  ;;  %v219_v33 = vmax.bf16 %v967_v24, %v203_v29  ;;  %v204_v35 = vld [vmem:[%s1059_s4 + $0x18] sm:$0xff]  ;;  %v206_v36 = vld [vmem:[%s1059_s4 + $0x24] sm:$0xff]  ;;  %v221_v43 = vmax.bf16 %v967_v24, %v205_v31  ;;  %v223_v44 = vmax.bf16 %v967_v24, %v207_v34  ;;  %v208_v49 = vld [vmem:[%s1059_s4 + $0x30] sm:$0xff] }
  0x14   : > { %857 = vmatprep.subr.bf16.mxu0 %v946_v11  ;;  %v754_v32 = vcombine.high %v216_v25, %v218_v26  ;;  %v220_v38 = vmax.bf16 %v967_v24, %v204_v35  ;;  %v222_v39 = vmax.bf16 %v967_v24, %v206_v36  ;;  %v209_v40 = vld [vmem:[%s1059_s4 + $0x38] sm:$0xf]  ;;  %v211_v41 = vld [vmem:[%s1059_s4 + $0x44] sm:$0xf]  ;;  %v753_v45 = vcombine.low %v216_v25, %v218_v26  ;;  %v210_v50 = vld [vmem:[%s1059_s4 + $0x3c] sm:$0xff] }
  0x15   : > { %908 = vmatpush3.bf16.msra.mxu1 %v947_v12  ;;  %v755_v42 = vcombine.low %v217_v30, %v219_v33  ;;  %v225_v46 = vmax.bf16 %v967_v24, %v209_v40  ;;  %v227_v47 = vmax.bf16 %v967_v24, %v211_v41  ;;  %v758_v51 = vcombine.low %v221_v43, %v223_v44  ;;  %v213_v53 = vld [vmem:[%s1059_s4 + $0x50] sm:$0xf]  ;;  %v215_v54 = vld [vmem:[%s1059_s4 + $0x5c] sm:$0xf]  ;;  %v212_v61 = vld [vmem:[%s1059_s4 + $0x48] sm:$0xff] }
  0x16   : > { %909 = vmatprep.subr.bf16.mxu1 %v950_v14  ;;  %536 = vmatprep.mubr.bf16.mxu0 %v754_v32  ;;  %v757_v48 = vcombine.high %v220_v38, %v222_v39  ;;  %v224_v55 = vmax.bf16 %v967_v24, %v208_v49  ;;  %v226_v56 = vmax.bf16 %v967_v24, %v210_v50  ;;  %v214_v62 = vld [vmem:[%s1059_s4 + $0x54] sm:$0xff]  ;;  %v810_v11 = vunpack.c.h.bf16 %v808_v5 }
  0x17   : > { %858 = vmatpush3.bf16.msra.mxu0 %v948_v13  ;;  %917 = vmatprep.mubr.bf16.mxu1 %v755_v42  ;;  %v761_v52 = vcombine.low %v225_v46, %v227_v47  ;;  %v229_v57 = vmax.bf16 %v967_v24, %v213_v53  ;;  %v231_v58 = vmax.bf16 %v967_v24, %v215_v54  ;;  %v844_v35 = vld [vmem:[%s1096_s19 + $0x10] sm:$0xff]  }
  0x18   : > { %859 = vmatprep.subr.bf16.mxu0 %v949_v15  ;;  %v756_v59 = vcombine.low %v220_v38, %v222_v39  ;;  %v760_v60 = vcombine.high %v224_v55, %v226_v56  ;;  %v228_v0 = vmax.bf16 %v967_v24, %v212_v61  ;;  %v230_v1 = vmax.bf16 %v967_v24, %v214_v62 }
  0x19   : > { %910 = vmatpush3.bf16.msra.mxu1 %v950_v14  ;;  %v764_v63 = vcombine.low %v229_v57, %v231_v58  ;;  %v759_v2 = vcombine.low %v224_v55, %v226_v56  ;;  %v817_v42 = vunpack.c.l.bf16 %v844_v35  ;;  %v818_v47 = vunpack.c.h.bf16 %v844_v35 }
  0x1a   : > { %911 = vmatprep.subr.bf16.mxu1 %v953_v17  ;;  %v763_v3 = vcombine.high %v228_v0, %v230_v1  ;;  %v762_v4 = vcombine.low %v228_v0, %v230_v1 }
  0x1b   : > { %860 = vmatpush3.bf16.msra.mxu0 %v951_v16 }
  0x1c   : > { %861 = vmatprep.subr.bf16.mxu0 %v952_v18  ;;  %v843_v18 = vld [vmem:[%s1096_s19 + $0x8] sm:$0xff]  }
  0x1d   : > { %912 = vmatpush3.bf16.msra.mxu1 %v953_v17  ;;  %v813_v24 = vunpack.c.l.bf16 %v843_v18  ;;  %v814_v29 = vunpack.c.h.bf16 %v843_v18 }
  0x1e   : > { %913 = vmatprep.subr.bf16.mxu1 %v956_v20 }
  0x1f   : > { %862 = vmatpush3.bf16.msra.mxu0 %v954_v19 }
  0x20   : > { %863 = vmatprep.subr.bf16.mxu0 %v955_v23 }
  0x21   : > { %914 = vmatpush3.bf16.msra.mxu1 %v956_v20 }
  0x22   : > { %915 = vmatprep.subr.bf16.mxu1 %v958_v37 }
  0x23   : > { %864 = vmatpush3.bf16.msra.mxu0 %v957_v28 }
  0x25   : > { %916 = vmatpush3.bf16.msra.mxu1 %v958_v37 }
  0x26   : > { %537 = vmatmul.mubr.bf16.vlgmr.msra.gmra.mrb[0].mxu0 %v753_v45 }
  0x27   : > { %544 = vmatprep.mubr.bf16.mxu0 %v757_v48 }
  0x28   : > { %918 = vmatmul.mubr.bf16.vlgmr.msra.gmra.mrb[0].mxu1 %v758_v51  ;;  %v845_v51 = vld [vmem:[%s1096_s19 + $0x18] sm:$0xff]  }
  0x29   : > { %921 = vmatprep.mubr.bf16.mxu1 %v761_v52  ;;  %v821_v56 = vunpack.c.l.bf16 %v845_v51  ;;  %v822_v61 = vunpack.c.h.bf16 %v845_v51 }
  0x2e   : > { %545 = vmatmul.mubr.bf16.gmra.mrb[4].mxu0 %v756_v59 }
  0x2f   : > { %552 = vmatprep.mubr.bf16.mxu0 %v760_v60 }
  0x30   : > { %922 = vmatmul.mubr.bf16.gmra.mrb[4].mxu1 %v764_v63 }
  0x36   : > { %553 = vmatmul.mubr.bf16.gmra.mrb[8].mxu0 %v759_v2 }
  0x37   : > { %560 = vmatprep.mubr.bf16.mxu0 %v763_v3 }
  0x3e   : > { %561 = vmatmul.mubr.bf16.gmra.mrb[12].mxu0 %v762_v4 }
  0xf9   : > { %v865_v6 = vpop.f32.mrb[0].mxu0 }
  0xfa   : > { %v866_v8 = vpop.f32.mrb[1].mxu0 }
  0xfb   : > { %v867_v9 = vadd.f32 %v866_v8, %v865_v6  ;;  %v868_v10 = vpop.f32.mrb[2].mxu0  ;;  %v919_v13 = vpop.f32.mrb[0].mxu1 }
  0xfc   : > { %v869_v12 = vpop.f32.mrb[3].mxu0  ;;  %v603_v16 = vpop.f32.mrb[1].mxu1 }
  0xfd   : > { %v870_v14 = vadd.f32 %v869_v12, %v868_v10  ;;  %v539_v15 = vadd.f32 %v867_v9, %v809_v7  ;;  %v920_v17 = vpop.f32.mrb[2].mxu1 }
  0xfe   : > { %v606_v21 = vpop.f32.mrb[3].mxu1 }
  0xff   : > { %v604_v19 = vadd.f32 %v603_v16, %v539_v15  ;;  %v542_v20 = vadd.f32 %v870_v14, %v810_v11 }
 0x101   : > { %v607_v22 = vadd.f32 %v606_v21, %v542_v20  ;;  %v871_v23 = vpop.f32.mrb[4].mxu0 }
 0x102   : > { %v872_v25 = vpop.f32.mrb[5].mxu0 }
 0x103   : > { %v826_v26 = vpack.c.bf16 %v607_v22, %v604_v19  ;;  %v873_v27 = vadd.f32 %v872_v25, %v871_v23  ;;  %v874_v28 = vpop.f32.mrb[6].mxu0  ;;  %v923_v31 = vpop.f32.mrb[4].mxu1 }
 0x104   : > { %v875_v30 = vpop.f32.mrb[7].mxu0  ;;  %v619_v34 = vpop.f32.mrb[5].mxu1 }
 0x105   : > { %827 = vst [vmem:[%s1103_s21] sm:$0xff] %v826_v26   ;;  %v547_v32 = vadd.f32 %v873_v27, %v813_v24  ;;  %v876_v33 = vadd.f32 %v875_v30, %v874_v28  ;;  %v924_v36 = vpop.f32.mrb[6].mxu1 }
 0x106   : > { %v622_v39 = vpop.f32.mrb[7].mxu1 }
 0x107   : > { %v612_v37 = vadd.f32 %v919_v13, %v547_v32  ;;  %v550_v38 = vadd.f32 %v876_v33, %v814_v29 }
 0x109   : > { %v615_v40 = vadd.f32 %v920_v17, %v550_v38  ;;  %v877_v41 = vpop.f32.mrb[8].mxu0 }
 0x10a   : > { %v878_v43 = vpop.f32.mrb[9].mxu0 }
 0x10b   : > { %v831_v44 = vpack.c.bf16 %v615_v40, %v612_v37  ;;  %v879_v45 = vadd.f32 %v878_v43, %v877_v41  ;;  %v880_v46 = vpop.f32.mrb[10].mxu0 }
 0x10c   : > { %v881_v48 = vpop.f32.mrb[11].mxu0 }
 0x10d   : > { %846 = vst [vmem:[%s1103_s21 + $0x8] sm:$0xff] %v831_v44   ;;  %v882_v49 = vadd.f32 %v881_v48, %v880_v46  ;;  %v555_v50 = vadd.f32 %v879_v45, %v817_v42 }
 0x10f   : > { %v620_v52 = vadd.f32 %v619_v34, %v555_v50  ;;  %v558_v53 = vadd.f32 %v882_v49, %v818_v47 }
 0x111   : > { %v623_v54 = vadd.f32 %v622_v39, %v558_v53  ;;  %v883_v55 = vpop.f32.mrb[12].mxu0 }
 0x112   : > { %v884_v57 = vpop.f32.mrb[13].mxu0 }
 0x113   : > { %v836_v58 = vpack.c.bf16 %v623_v54, %v620_v52  ;;  %v885_v59 = vadd.f32 %v884_v57, %v883_v55  ;;  %v886_v60 = vpop.f32.mrb[14].mxu0 }
 0x114   : > { %v887_v62 = vpop.f32.mrb[15].mxu0 }
 0x115   : > { %847 = vst [vmem:[%s1103_s21 + $0x10] sm:$0xff] %v836_v58   ;;  %v563_v63 = vadd.f32 %v885_v59, %v821_v56  ;;  %v888_v0 = vadd.f32 %v887_v62, %v886_v60 }
 0x117   : > { %v628_v1 = vadd.f32 %v923_v31, %v563_v63  ;;  %v566_v2 = vadd.f32 %v888_v0, %v822_v61 }
 0x119   : > { %v631_v3 = vadd.f32 %v924_v36, %v566_v2 }
 0x11b   : > { %v841_v4 = vpack.c.bf16 %v631_v3, %v628_v1 }
 0x11d   : > { %848 = vst [vmem:[%s1103_s21 + $0x18] sm:$0xff] %v841_v4  }
 0x11e PF: > { %s13_s12 = sadd.s32 1, %s965_s12  }
 0x11f   : > { %p10_p4 = scmp.ge.s32.totalorder %s13_s12, 4  }
 0x121   :  { %12 = sbr.rel (!%p10_p4) target bundleno = 1 (0x1), region = 65 }

// kernel: wrn_mcdonnell_forward.13
= control target key start
LH: loop header
LB: loop body
LE: loop exit
PB: predicated region body
PF: predicated region fallthrough
CT: control target
= control target key end

     0   :  { %s675_s9 = smov 0   ;;  %s777_s0 = inlined_call_operand.vmem [shape: bf16[32,384], index: 0, kind: input, shape index: {}]   ;;  %s778_s1 = inlined_call_operand.vmem [shape: bf16[384,128], index: 1, kind: input, shape index: {}]   ;;  %s779_s2 = inlined_call_operand.vmem [shape: bf16[32,128], index: 2, kind: output, shape index: {}]  }
   0x1 LB: > { %s515_s10 = sadd.s32 4294967295, %s655_s9   ;;  %p519_p0 = scmp.ge.s32.totalorder %s655_s9, 1  ;;  %s655_s9 = sphi %s675_s9, %s12_s9  }
   0x2   : > { %p114_p1 = scmp.lt.s32.totalorder %s655_s9, 3 }
   0x4   : > { %p115_p2 = pnand %p519_p0, %p114_p1 }
   0x5   : > { %v625_v0 = vld [vmem:[%s778_s1 + $0x40] sm:$0xff] (!%p115_p2)   ;;  %v657_v1 = vmov (!%p115_p2), 0.0   ;;  %v628_v4 = vld [vmem:[%s778_s1 + $0x48] sm:$0xff] (!%p115_p2)   ;;  %v631_v7 = vld [vmem:[%s778_s1 + $0x50] sm:$0xff] (!%p115_p2)   ;;  %s520_s25 = sshll.u32 (!%p115_p2), %s515_s10, 1  ;;  %vm658_vm0 = vmmov (!%p115_p2), 0  }
   0x6   : > { %118 = sbr.rel (%p115_p2) target bundleno = 260 (0x104), region = 28  ;;  %593 = vmatprep.subr.bf16.mxu1 (!%p115_p2), %v657_v1  ;;  %v626_v2 = vld [vmem:[%s778_s1] sm:$0xff] (!%p115_p2)   ;;  %562 = vmatprep.subr.bf16.mxu0 (!%p115_p2), %v625_v0  ;;  %v629_v5 = vld [vmem:[%s778_s1 + $0x8] sm:$0xff] (!%p115_p2)   ;;  %v632_v8 = vld [vmem:[%s778_s1 + $0x10] sm:$0xff] (!%p115_p2)   ;;  %p138_p3 = scmp.lt.s32.totalorder (!%p115_p2), %s520_s25, 3  ;;  %v659_v26 = vmov (!%p115_p2), 0  }
   0x7   : > { %v627_v3 = vld [vmem:[%s778_s1 + $0x80] sm:$0xff] (!%p115_p2)   ;;  %563 = vmatpush3.bf16.msra.mxu0 (!%p115_p2), %v626_v2  ;;  %v630_v6 = vld [vmem:[%s778_s1 + $0x88] sm:$0xff] (!%p115_p2)   ;;  %609 = vmatprep.mubr.msk.bf16.mxu1 (!%p115_p2), %vm658_vm0, %v657_v1  ;;  %v633_v9 = vld [vmem:[%s778_s1 + $0x90] sm:$0xff] (!%p115_p2)  }
   0x8   : > { %594 = vmatpush3.bf16.msra.mxu1 (!%p115_p2), %v627_v3  ;;  %564 = vmatprep.subr.bf16.mxu0 (!%p115_p2), %v628_v4  ;;  %v634_v10 = vld [vmem:[%s778_s1 + $0x58] sm:$0xff] (!%p115_p2)   ;;  %v637_v13 = vld [vmem:[%s778_s1 + $0x60] sm:$0xff] (!%p115_p2)   ;;  %v640_v16 = vld [vmem:[%s778_s1 + $0x68] sm:$0xff] (!%p115_p2)  }
   0x9   : > { %595 = vmatprep.subr.bf16.mxu1 (!%p115_p2), %v657_v1  ;;  %v635_v11 = vld [vmem:[%s778_s1 + $0x18] sm:$0xff] (!%p115_p2)   ;;  %v638_v14 = vld [vmem:[%s778_s1 + $0x20] sm:$0xff] (!%p115_p2)   ;;  %v641_v17 = vld [vmem:[%s778_s1 + $0x28] sm:$0xff] (!%p115_p2)  }
   0xa   : > { %v636_v12 = vld [vmem:[%s778_s1 + $0x98] sm:$0xff] (!%p115_p2)   ;;  %v639_v15 = vld [vmem:[%s778_s1 + $0xa0] sm:$0xff] (!%p115_p2)   ;;  %v642_v18 = vld [vmem:[%s778_s1 + $0xa8] sm:$0xff] (!%p115_p2)  }
   0xb   : > { %565 = vmatpush3.bf16.msra.mxu0 (!%p115_p2), %v629_v5  ;;  %v643_v19 = vld [vmem:[%s778_s1 + $0x70] sm:$0xff] (!%p115_p2)   ;;  %v646_v22 = vld [vmem:[%s778_s1 + $0x78] sm:$0xff] (!%p115_p2)  }
   0xc   : > { %596 = vmatpush3.bf16.msra.mxu1 (!%p115_p2), %v630_v6  ;;  %566 = vmatprep.subr.bf16.mxu0 (!%p115_p2), %v631_v7  ;;  %v644_v20 = vld [vmem:[%s778_s1 + $0x30] sm:$0xff] (!%p115_p2)   ;;  %v647_v30 = vld [vmem:[%s778_s1 + $0x38] sm:$0xff] (!%p115_p2)  }
   0xd   : > { %597 = vmatprep.subr.bf16.mxu1 %v657_v1  ;;  %s781_s25 = smov (!%p138_p3, %s520_s25), 3  ;;  %v645_v21 = vld [vmem:[%s778_s1 + $0xb0] sm:$0xff]   ;;  %v648_v34 = vld [vmem:[%s778_s1 + $0xb8] sm:$0xff]  }
   0xe   : > { %s613_s17 = smul.u32 12, %s781_s25  ;;  %s523_s11 = sshll.u32 %s781_s25, 2 }
   0xf   : > { %567 = vmatpush3.bf16.msra.mxu0 %v632_v8  ;;  %s148_s14 = scalar_lea.vmem %s779_s2, %s523_s11 }
  0x10   : > { %598 = vmatpush3.bf16.msra.mxu1 %v633_v9  ;;  %568 = vmatprep.subr.bf16.mxu0 %v634_v10  ;;  %s142_s29 = scalar_lea.vmem %s777_s0, %s613_s17 }
  0x11   : > { %599 = vmatprep.subr.bf16.mxu1 %v657_v1  ;;  %v151_v23 = vld [vmem:[%s142_s29] sm:$0xff]  ;;  %v153_v24 = vld [vmem:[%s142_s29 + $0xc] sm:$0xff]  ;;  %v152_v25 = vld [vmem:[%s142_s29 + $0x8] sm:$0xf] }
  0x12   : > { %v155_v27 = vmax.bf16 %v659_v26, %v151_v23  ;;  %v157_v28 = vmax.bf16 %v659_v26, %v153_v24  ;;  %v154_v29 = vld [vmem:[%s142_s29 + $0x14] sm:$0xf]  ;;  %v156_v32 = vmax.bf16 %v659_v26, %v152_v25 }
  0x13   : > { %569 = vmatpush3.bf16.msra.mxu0 %v635_v11  ;;  %v158_v33 = vmax.bf16 %v659_v26, %v154_v29 }
  0x14   : > { %600 = vmatpush3.bf16.msra.mxu1 %v636_v12  ;;  %570 = vmatprep.subr.bf16.mxu0 %v637_v13  ;;  %v525_v31 = vcombine.high %v155_v27, %v157_v28  ;;  %v524_v35 = vcombine.low %v155_v27, %v157_v28 }
  0x15   : > { %601 = vmatprep.subr.bf16.mxu1 %v657_v1  ;;  %v526_v36 = vcombine.low %v156_v32, %v158_v33 }
  0x16   : > { %399 = vmatprep.mubr.bf16.mxu0 %v525_v31 }
  0x17   : > { %571 = vmatpush3.bf16.msra.mxu0 %v638_v14 }
  0x18   : > { %602 = vmatpush3.bf16.msra.mxu1 %v639_v15  ;;  %572 = vmatprep.subr.bf16.mxu0 %v640_v16 }
  0x19   : > { %603 = vmatprep.subr.bf16.mxu1 %v657_v1 }
  0x1b   : > { %573 = vmatpush3.bf16.msra.mxu0 %v641_v17 }
  0x1c   : > { %604 = vmatpush3.bf16.msra.mxu1 %v642_v18  ;;  %574 = vmatprep.subr.bf16.mxu0 %v643_v19 }
  0x1d   : > { %605 = vmatprep.subr.bf16.mxu1 %v657_v1 }
  0x1f   : > { %575 = vmatpush3.bf16.msra.mxu0 %v644_v20 }
  0x20   : > { %606 = vmatpush3.bf16.msra.mxu1 %v645_v21  ;;  %576 = vmatprep.subr.bf16.mxu0 %v646_v22 }
  0x21   : > { %607 = vmatprep.subr.bf16.mxu1 %v657_v1 }
  0x23   : > { %577 = vmatpush3.bf16.msra.mxu0 %v647_v30 }
  0x24   : > { %608 = vmatpush3.bf16.msra.mxu1 %v648_v34 }
  0x26   : > { %400 = vmatmul.mubr.bf16.vlgmr.msra.gmra.mrb[0].mxu0 %v524_v35 }
  0x27   : > { %610 = vmatmul.mubr.bf16.vlgmr.msra.gmra.mrb[0].mxu1 %v526_v36 }
  0xf9   : > { %v578_v37 = vpop.f32.mrb[0].mxu0 }
  0xfa   : > { %v442_v38 = vpop.f32.mrb[0].mxu1  ;;  %v579_v39 = vpop.f32.mrb[1].mxu0 }
  0xfb   : > { %v580_v40 = vadd.f32 %v579_v39, %v578_v37  ;;  %v611_v41 = vpop.f32.mrb[1].mxu1  ;;  %v581_v42 = vpop.f32.mrb[2].mxu0 }
  0xfc   : > { %v445_v43 = vpop.f32.mrb[2].mxu1  ;;  %v582_v44 = vpop.f32.mrb[3].mxu0 }
  0xfd   : > { %v443_v45 = vadd.f32 %v580_v40, %v442_v38  ;;  %v583_v46 = vadd.f32 %v582_v44, %v581_v42  ;;  %v612_v47 = vpop.f32.mrb[3].mxu1 }
  0xff   : > { %v446_v48 = vadd.f32 %v583_v46, %v445_v43 }
 0x101   : > { %v560_v49 = vpack.c.bf16 %v446_v48, %v443_v45 }
 0x103   : > { %561 = vst [vmem:[%s148_s14] sm:$0xff] %v560_v49  }
 0x104 PF: > { %s12_s9 = sadd.s32 1, %s655_s9  }
 0x105   : > { %p9_p4 = scmp.ge.s32.totalorder %s12_s9, 4  }
 0x107   :  { %11 = sbr.rel (!%p9_p4) target bundleno = 1 (0x1), region = 58 }

// kernel: wrn_mcdonnell_forward.15
= control target key start
LH: loop header
LB: loop body
LE: loop exit
PB: predicated region body
PF: predicated region fallthrough
CT: control target
= control target key end

     0   :  { %s415_s9 = smov 0   ;;  %s456_s0 = inlined_call_operand.vmem [shape: bf16[32,128], index: 0, kind: input, shape index: {}]   ;;  %s457_s1 = inlined_call_operand.vmem [shape: bf16[128,128], index: 1, kind: input, shape index: {}]   ;;  %s458_s2 = inlined_call_operand.vmem [shape: f32[32,128], index: 2, kind: output, shape index: {}]  }
   0x1 LB: > { %s321_s10 = sadd.s32 4294967295, %s395_s9   ;;  %p325_p0 = scmp.ge.s32.totalorder %s395_s9, 1  ;;  %s395_s9 = sphi %s415_s9, %s12_s9  }
   0x2   : > { %p113_p1 = scmp.lt.s32.totalorder %s395_s9, 3 }
   0x4   : > { %p114_p2 = pnand %p325_p0, %p113_p1 }
   0x5   : > { %v381_v0 = vld [vmem:[%s457_s1] sm:$0xff] (!%p114_p2)   ;;  %v397_v1 = vmov (!%p114_p2), 0.0   ;;  %v382_v2 = vld [vmem:[%s457_s1 + $0x8] sm:$0xff] (!%p114_p2)   ;;  %vm398_vm0 = vmmov (!%p114_p2), 0   ;;  %s326_s15 = sshll.u32 (!%p114_p2), %s321_s10, 1  ;;  %v383_v3 = vld [vmem:[%s457_s1 + $0x10] sm:$0xff] (!%p114_p2)  }
   0x6   : > { %117 = sbr.rel (%p114_p2) target bundleno = 253 (0xfd), region = 28  ;;  %350 = vmatprep.subr.bf16.mxu0 (!%p114_p2), %v397_v1  ;;  %366 = vmatprep.mubr.msk.bf16.mxu0 (!%p114_p2), %vm398_vm0, %v397_v1  ;;  %p136_p3 = scmp.lt.s32.totalorder (!%p114_p2), %s326_s15, 3  ;;  %v384_v4 = vld [vmem:[%s457_s1 + $0x18] sm:$0xff] (!%p114_p2)   ;;  %v385_v5 = vld [vmem:[%s457_s1 + $0x20] sm:$0xff] (!%p114_p2)   ;;  %v386_v6 = vld [vmem:[%s457_s1 + $0x28] sm:$0xff] (!%p114_p2)   ;;  %v399_v10 = vmov (!%p114_p2), 0  }
   0x7   : > { %351 = vmatpush3.bf16.msra.mxu0 (!%p114_p2), %v381_v0  ;;  %v387_v7 = vld [vmem:[%s457_s1 + $0x30] sm:$0xff] (!%p114_p2)   ;;  %v388_v13 = vld [vmem:[%s457_s1 + $0x38] sm:$0xff] (!%p114_p2)  }
   0x8   : > { %352 = vmatprep.subr.bf16.mxu0 (!%p114_p2), %v397_v1 }
   0xb   : > { %353 = vmatpush3.bf16.msra.mxu0 (!%p114_p2), %v382_v2 }
   0xc   : > { %354 = vmatprep.subr.bf16.mxu0 (!%p114_p2), %v397_v1 }
   0xd   : > { %s460_s15 = smov (!%p136_p3, %s326_s15), 3 }
   0xe   : > { %s327_s22 = sshll.u32 %s460_s15, 2  ;;  %s329_s4 = sshll.u32 %s460_s15, 3 }
   0xf   : > { %355 = vmatpush3.bf16.msra.mxu0 %v383_v3  ;;  %s139_s27 = scalar_lea.vmem %s456_s0, %s327_s22  ;;  %s145_s7 = scalar_lea.vmem %s458_s2, %s329_s4 }
  0x10   : > { %356 = vmatprep.subr.bf16.mxu0 %v397_v1  ;;  %v148_v8 = vld [vmem:[%s139_s27] sm:$0xf]  ;;  %v149_v9 = vld [vmem:[%s139_s27 + $0x4] sm:$0xf] }
  0x11   : > { %v150_v11 = vmax.bf16 %v399_v10, %v148_v8  ;;  %v151_v12 = vmax.bf16 %v399_v10, %v149_v9 }
  0x13   : > { %357 = vmatpush3.bf16.msra.mxu0 %v384_v4  ;;  %v330_v14 = vcombine.low %v150_v11, %v151_v12 }
  0x14   : > { %358 = vmatprep.subr.bf16.mxu0 %v397_v1 }
  0x17   : > { %359 = vmatpush3.bf16.msra.mxu0 %v385_v5 }
  0x18   : > { %360 = vmatprep.subr.bf16.mxu0 %v397_v1 }
  0x1b   : > { %361 = vmatpush3.bf16.msra.mxu0 %v386_v6 }
  0x1c   : > { %362 = vmatprep.subr.bf16.mxu0 %v397_v1 }
  0x1f   : > { %363 = vmatpush3.bf16.msra.mxu0 %v387_v7 }
  0x20   : > { %364 = vmatprep.subr.bf16.mxu0 %v397_v1 }
  0x23   : > { %365 = vmatpush3.bf16.msra.mxu0 %v388_v13 }
  0x26   : > { %367 = vmatmul.mubr.bf16.vlgmr.msra.gmra.mrb[0].mxu0 %v330_v14 }
  0xf9   : > { %v256_v15 = vpop.f32.mrb[0].mxu0 }
  0xfa   : > { %263 = vst [vmem:[%s145_s7] sm:$0xff] %v256_v15  ;;  %v368_v16 = vpop.f32.mrb[1].mxu0 }
  0xfb   : > { %v259_v17 = vpop.f32.mrb[2].mxu0 }
  0xfc   : > { %264 = vst [vmem:[%s145_s7 + $0x8] sm:$0xff] %v259_v17  ;;  %v369_v18 = vpop.f32.mrb[3].mxu0 }
  0xfd PF: > { %s12_s9 = sadd.s32 1, %s395_s9  }
  0xfe   : > { %p9_p4 = scmp.ge.s32.totalorder %s12_s9, 4  }
 0x100   :  { %11 = sbr.rel (!%p9_p4) target bundleno = 1 (0x1), region = 58 }

// kernel: wrn_mcdonnell_forward.14
= control target key start
LH: loop header
LB: loop body
LE: loop exit
PB: predicated region body
PF: predicated region fallthrough
CT: control target
= control target key end

     0   :  { %s990_s12 = smov 0   ;;  %s1144_s0 = inlined_call_operand.vmem [shape: bf16[32,640], index: 0, kind: input, shape index: {}]   ;;  %s1145_s1 = inlined_call_operand.vmem [shape: bf16[640,128], index: 1, kind: input, shape index: {}]   ;;  %s1146_s2 = inlined_call_operand.vmem [shape: bf16[32,128], index: 2, kind: input, shape index: {}]   ;;  %s1147_s3 = inlined_call_operand.vmem [shape: bf16[32,128], index: 3, kind: output, shape index: {}]  }
   0x1 LB: > { %s763_s13 = sadd.s32 4294967295, %s965_s12   ;;  %p767_p0 = scmp.ge.s32.totalorder %s965_s12, 1  ;;  %s965_s12 = sphi %s990_s12, %s13_s12  }
   0x2   : > { %p150_p1 = scmp.lt.s32.totalorder %s965_s12, 3 }
   0x4   : > { %p151_p2 = pnand %p767_p0, %p150_p1 }
   0x5   : > { %v919_v0 = vld [vmem:[%s1145_s1 + $0x40] sm:$0xff] (!%p151_p2)   ;;  %v923_v4 = vld [vmem:[%s1145_s1 + $0x48] sm:$0xff] (!%p151_p2)   ;;  %v927_v8 = vld [vmem:[%s1145_s1 + $0x50] sm:$0xff] (!%p151_p2)   ;;  %s768_s17 = sshll.u32 (!%p151_p2), %s763_s13, 1  ;;  %v967_v33 = vmov (!%p151_p2), 0   ;;  %v968_v37 = vmov (!%p151_p2), 0.0  }
   0x6   : > { %154 = sbr.rel (%p151_p2) target bundleno = 289 (0x121), region = 32  ;;  %v920_v1 = vld [vmem:[%s1145_s1] sm:$0xff] (!%p151_p2)   ;;  %834 = vmatprep.subr.bf16.mxu0 (!%p151_p2), %v919_v0  ;;  %v924_v5 = vld [vmem:[%s1145_s1 + $0x8] sm:$0xff] (!%p151_p2)   ;;  %v928_v9 = vld [vmem:[%s1145_s1 + $0x10] sm:$0xff] (!%p151_p2)   ;;  %p181_p3 = scmp.lt.s32.totalorder (!%p151_p2), %s768_s17, 3  ;;  %vm969_vm0 = vmmov (!%p151_p2), 0  }
   0x7   : > { %v921_v2 = vld [vmem:[%s1145_s1 + $0xc0] sm:$0xff] (!%p151_p2)   ;;  %835 = vmatpush3.bf16.msra.mxu0 (!%p151_p2), %v920_v1  ;;  %v925_v6 = vld [vmem:[%s1145_s1 + $0xc8] sm:$0xff] (!%p151_p2)   ;;  %v929_v10 = vld [vmem:[%s1145_s1 + $0xd0] sm:$0xff] (!%p151_p2)  }
   0x8   : > { %v922_v3 = vld [vmem:[%s1145_s1 + $0x80] sm:$0xff] (!%p151_p2)   ;;  %856 = vmatprep.subr.bf16.mxu1 (!%p151_p2), %v921_v2  ;;  %836 = vmatprep.subr.bf16.mxu0 (!%p151_p2), %v923_v4  ;;  %v926_v7 = vld [vmem:[%s1145_s1 + $0x88] sm:$0xff] (!%p151_p2)   ;;  %v930_v11 = vld [vmem:[%s1145_s1 + $0x90] sm:$0xff] (!%p151_p2)  }
   0x9   : > { %857 = vmatpush3.bf16.msra.mxu1 (!%p151_p2), %v922_v3  ;;  %v931_v12 = vld [vmem:[%s1145_s1 + $0x58] sm:$0xff] (!%p151_p2)   ;;  %v935_v16 = vld [vmem:[%s1145_s1 + $0x60] sm:$0xff] (!%p151_p2)   ;;  %v939_v20 = vld [vmem:[%s1145_s1 + $0x68] sm:$0xff] (!%p151_p2)  }
   0xa   : > { %858 = vmatprep.subr.bf16.mxu1 (!%p151_p2), %v925_v6  ;;  %v932_v13 = vld [vmem:[%s1145_s1 + $0x18] sm:$0xff] (!%p151_p2)   ;;  %v936_v17 = vld [vmem:[%s1145_s1 + $0x20] sm:$0xff] (!%p151_p2)   ;;  %v940_v21 = vld [vmem:[%s1145_s1 + $0x28] sm:$0xff] (!%p151_p2)  }
   0xb   : > { %837 = vmatpush3.bf16.msra.mxu0 (!%p151_p2), %v924_v5  ;;  %v933_v14 = vld [vmem:[%s1145_s1 + $0xd8] sm:$0xff] (!%p151_p2)   ;;  %v937_v18 = vld [vmem:[%s1145_s1 + $0xe0] sm:$0xff] (!%p151_p2)   ;;  %v941_v22 = vld [vmem:[%s1145_s1 + $0xe8] sm:$0xff] (!%p151_p2)  }
   0xc   : > { %838 = vmatprep.subr.bf16.mxu0 (!%p151_p2), %v927_v8  ;;  %v934_v15 = vld [vmem:[%s1145_s1 + $0x98] sm:$0xff] (!%p151_p2)   ;;  %v938_v19 = vld [vmem:[%s1145_s1 + $0xa0] sm:$0xff] (!%p151_p2)   ;;  %v942_v23 = vld [vmem:[%s1145_s1 + $0xa8] sm:$0xff] (!%p151_p2)  }
   0xd   : > { %859 = vmatpush3.bf16.msra.mxu1 %v926_v7  ;;  %s1149_s17 = smov (!%p181_p3, %s768_s17), 3  ;;  %v943_v24 = vld [vmem:[%s1145_s1 + $0x70] sm:$0xff]   ;;  %v947_v28 = vld [vmem:[%s1145_s1 + $0x78] sm:$0xff]   ;;  %v951_v44 = vld [vmem:[%s1145_s1 + $0x100] sm:$0xff]  }
   0xe   : > { %860 = vmatprep.subr.bf16.mxu1 %v929_v10  ;;  %s907_s14 = smul.u32 20, %s1149_s17  ;;  %v944_v25 = vld [vmem:[%s1145_s1 + $0x30] sm:$0xff]   ;;  %v948_v29 = vld [vmem:[%s1145_s1 + $0x38] sm:$0xff]   ;;  %v952_v47 = vld [vmem:[%s1145_s1 + $0x108] sm:$0xff]   ;;  %s771_s24 = sshll.u32 %s1149_s17, 2 }
   0xf   : > { %839 = vmatpush3.bf16.msra.mxu0 %v928_v9  ;;  %v945_v26 = vld [vmem:[%s1145_s1 + $0xf0] sm:$0xff]   ;;  %v949_v30 = vld [vmem:[%s1145_s1 + $0xf8] sm:$0xff]   ;;  %v955_v50 = vld [vmem:[%s1145_s1 + $0x120] sm:$0xff]   ;;  %s191_s27 = scalar_lea.vmem %s1146_s2, %s771_s24  ;;  %s197_s28 = scalar_lea.vmem %s1147_s3, %s771_s24 }
  0x10   : > { %840 = vmatprep.subr.bf16.mxu0 %v931_v12  ;;  %v946_v27 = vld [vmem:[%s1145_s1 + $0xb0] sm:$0xff]   ;;  %s1093_s13 = scalar_lea.vmem %s1144_s0, %s907_s14  ;;  %v950_v36 = vld [vmem:[%s1145_s1 + $0xb8] sm:$0xff]   ;;  %v956_v51 = vld [vmem:[%s1145_s1 + $0x128] sm:$0xff]  }
  0x11   : > { %861 = vmatpush3.bf16.msra.mxu1 %v930_v11  ;;  %v200_v31 = vld [vmem:[%s1093_s13] sm:$0xff]  ;;  %v203_v32 = vld [vmem:[%s1093_s13 + $0x14] sm:$0xff]  ;;  %v201_v38 = vld [vmem:[%s1093_s13 + $0x8] sm:$0xff] }
  0x12   : > { %862 = vmatprep.subr.bf16.mxu1 %v933_v14  ;;  %v206_v34 = vmax.bf16 %v967_v33, %v200_v31  ;;  %v209_v35 = vmax.bf16 %v967_v33, %v203_v32  ;;  %v204_v39 = vld [vmem:[%s1093_s13 + $0x1c] sm:$0xff]  ;;  %v207_v40 = vmax.bf16 %v967_v33, %v201_v38  ;;  %v953_v48 = vld [vmem:[%s1145_s1 + $0x110] sm:$0xff]   ;;  %v205_v54 = vld [vmem:[%s1093_s13 + $0x24] sm:$0xf] }
  0x13   : > { %841 = vmatpush3.bf16.msra.mxu0 %v932_v13  ;;  %v210_v43 = vmax.bf16 %v967_v33, %v204_v39  ;;  %v954_v49 = vld [vmem:[%s1145_s1 + $0x118] sm:$0xff]   ;;  %v957_v52 = vld [vmem:[%s1145_s1 + $0x130] sm:$0xff]   ;;  %v211_v56 = vmax.bf16 %v967_v33, %v205_v54  ;;  %v826_v59 = vld [vmem:[%s191_s27] sm:$0xff]  }
  0x14   : > { %842 = vmatprep.subr.bf16.mxu0 %v935_v16  ;;  %v775_v41 = vcombine.high %v206_v34, %v209_v35  ;;  %v774_v42 = vcombine.low %v206_v34, %v209_v35  ;;  %v202_v53 = vld [vmem:[%s1093_s13 + $0x10] sm:$0xf]  ;;  %v958_v57 = vld [vmem:[%s1145_s1 + $0x138] sm:$0xff]   ;;  %v827_v61 = vunpack.c.l.bf16 %v826_v59  ;;  %v828_v2 = vunpack.c.h.bf16 %v826_v59 }
  0x15   : > { %863 = vmatpush3.bf16.msra.mxu1 %v934_v15  ;;  %v777_v45 = vcombine.high %v207_v40, %v210_v43  ;;  %v776_v46 = vcombine.low %v207_v40, %v210_v43  ;;  %v208_v55 = vmax.bf16 %v967_v33, %v202_v53 }
  0x16   : > { %864 = vmatprep.subr.bf16.mxu1 %v937_v18  ;;  %594 = vmatprep.mubr.bf16.mxu0 %v775_v41 }
  0x17   : > { %843 = vmatpush3.bf16.msra.mxu0 %v936_v17  ;;  %635 = vmatprep.mubr.bf16.mxu1 %v777_v45  ;;  %v778_v58 = vcombine.low %v208_v55, %v211_v56 }
  0x18   : > { %844 = vmatprep.subr.bf16.mxu0 %v939_v20 }
  0x19   : > { %865 = vmatpush3.bf16.msra.mxu1 %v938_v19 }
  0x1a   : > { %866 = vmatprep.subr.bf16.mxu1 %v941_v22 }
  0x1b   : > { %845 = vmatpush3.bf16.msra.mxu0 %v940_v21 }
  0x1c   : > { %846 = vmatprep.subr.bf16.mxu0 %v943_v24 }
  0x1d   : > { %867 = vmatpush3.bf16.msra.mxu1 %v942_v23 }
  0x1e   : > { %868 = vmatprep.subr.bf16.mxu1 %v945_v26 }
  0x1f   : > { %847 = vmatpush3.bf16.msra.mxu0 %v944_v25 }
  0x20   : > { %848 = vmatprep.subr.bf16.mxu0 %v947_v28 }
  0x21   : > { %869 = vmatpush3.bf16.msra.mxu1 %v946_v27 }
  0x22   : > { %870 = vmatprep.subr.bf16.mxu1 %v949_v30 }
  0x23   : > { %849 = vmatpush3.bf16.msra.mxu0 %v948_v29 }
  0x24   : > { %887 = vmatprep.subr.bf16.mxu0 %v968_v37 }
  0x25   : > { %871 = vmatpush3.bf16.msra.mxu1 %v950_v36 }
  0x26   : > { %595 = vmatmul.mubr.bf16.vlgmr.msra.gmra.mrb[0].mxu0 %v774_v42 }
  0x27   : > { %888 = vmatpush3.bf16.msra.mxu0 %v951_v44  ;;  %903 = vmatprep.mubr.msk.bf16.mxu0 %vm969_vm0, %v968_v37 }
  0x28   : > { %636 = vmatmul.mubr.bf16.vlgmr.msra.gmra.mrb[0].mxu1 %v776_v46  ;;  %889 = vmatprep.subr.bf16.mxu0 %v968_v37 }
  0x2b   : > { %890 = vmatpush3.bf16.msra.mxu0 %v952_v47 }
  0x2c   : > { %891 = vmatprep.subr.bf16.mxu0 %v968_v37 }
  0x2f   : > { %892 = vmatpush3.bf16.msra.mxu0 %v953_v48 }
  0x30   : > { %893 = vmatprep.subr.bf16.mxu0 %v968_v37 }
  0x33   : > { %894 = vmatpush3.bf16.msra.mxu0 %v954_v49 }
  0x34   : > { %895 = vmatprep.subr.bf16.mxu0 %v968_v37 }
  0x37   : > { %896 = vmatpush3.bf16.msra.mxu0 %v955_v50 }
  0x38   : > { %897 = vmatprep.subr.bf16.mxu0 %v968_v37 }
  0x3b   : > { %898 = vmatpush3.bf16.msra.mxu0 %v956_v51 }
  0x3c   : > { %899 = vmatprep.subr.bf16.mxu0 %v968_v37 }
  0x3f   : > { %900 = vmatpush3.bf16.msra.mxu0 %v957_v52 }
  0x40   : > { %901 = vmatprep.subr.bf16.mxu0 %v968_v37 }
  0x43   : > { %902 = vmatpush3.bf16.msra.mxu0 %v958_v57 }
  0x46   : > { %904 = vmatmul.mubr.bf16.vlgmr.msra.gmra.mrb[4].mxu0 %v778_v58 }
  0xf9   : > { %v850_v60 = vpop.f32.mrb[0].mxu0 }
  0xfa   : > { %v851_v62 = vpop.f32.mrb[1].mxu0 }
  0xfb   : > { %v852_v63 = vadd.f32 %v851_v62, %v850_v60  ;;  %v853_v0 = vpop.f32.mrb[2].mxu0  ;;  %v872_v1 = vpop.f32.mrb[0].mxu1 }
  0xfc   : > { %v854_v3 = vpop.f32.mrb[3].mxu0  ;;  %v873_v4 = vpop.f32.mrb[1].mxu1 }
  0xfd   : > { %v597_v5 = vadd.f32 %v852_v63, %v827_v61  ;;  %v855_v6 = vadd.f32 %v854_v3, %v853_v0  ;;  %v874_v7 = vadd.f32 %v873_v4, %v872_v1  ;;  %v875_v8 = vpop.f32.mrb[2].mxu1 }
  0xfe   : > { %v876_v9 = vpop.f32.mrb[3].mxu1 }
  0xff   : > { %v600_v10 = vadd.f32 %v855_v6, %v828_v2  ;;  %v877_v11 = vadd.f32 %v876_v9, %v875_v8  ;;  %v638_v12 = vadd.f32 %v874_v7, %v597_v5 }
 0x101   : > { %v641_v13 = vadd.f32 %v877_v11, %v600_v10 }
 0x119   : > { %v678_v14 = vpop.f32.mrb[4].mxu0 }
 0x11a   : > { %v679_v15 = vadd.f32 %v678_v14, %v638_v12  ;;  %v905_v16 = vpop.f32.mrb[5].mxu0 }
 0x11b   : > { %v681_v17 = vpop.f32.mrb[6].mxu0 }
 0x11c   : > { %v682_v18 = vadd.f32 %v681_v17, %v641_v13  ;;  %v906_v19 = vpop.f32.mrb[7].mxu0 }
 0x11e   : > { %v832_v20 = vpack.c.bf16 %v682_v18, %v679_v15 }
 0x120   : > { %833 = vst [vmem:[%s197_s28] sm:$0xff] %v832_v20  }
 0x121 PF: > { %s13_s12 = sadd.s32 1, %s965_s12  }
 0x122   : > { %p10_p4 = scmp.ge.s32.totalorder %s13_s12, 4  }
 0x124   :  { %12 = sbr.rel (!%p10_p4) target bundleno = 1 (0x1), region = 65 }

</bundles_post_ra>
